<compile_context>
chip_gen: v7x
topology: tpu7x:2x2x1
jax: 0.10.0
libtpu: 0.0.40
codegen_flags: <defaults>
</compile_context>

<pallas_src>
import functools

import jax
import jax.numpy as jnp
from jax.experimental import pallas as pl
from jax.experimental.pallas import tpu as pltpu


def _rup(x, m=128):
    return ((x + m - 1) // m) * m


# ----------------------------------------------------------------------------
# Fused kernel: conv_extractor (3x [1x1 conv + PReLU]) + scorer (1x1 conv)
# ----------------------------------------------------------------------------
def extractor_scorer_kernel(scal_ref,                        # SMEM (4,): prelu a1,a2,a3, scorer bias
                            x_ref,                           # (TN, F)        f32
                            w1_ref, b1_ref,                  # (F, 512) bf16, (1, 512) f32
                            w2_ref, b2_ref,                  # (512, FC1p) bf16, (1, FC1p) f32
                            w3_ref, b3_ref,                  # (FC1p, FC2p) bf16, (1, FC2p) f32
                            ws_ref,                          # (1, FC2p) bf16  scorer weight row
                            score_ref):                      # out: (1, TN)  lane-dense f32 scores
    # Cast MXU operands to bf16 (matches default MXU precision, halves weight
    # DMA); accumulate in f32; PReLU stays f32 on the VPU.
    x = x_ref[...].astype(jnp.bfloat16)

    h = jnp.dot(x, w1_ref[...], preferred_element_type=jnp.float32) + b1_ref[...]
    h = jnp.where(h > 0.0, h, scal_ref[0] * h)               # PReLU (scalar slope)

    h = jnp.dot(h.astype(jnp.bfloat16), w2_ref[...],
                preferred_element_type=jnp.float32) + b2_ref[...]
    h = jnp.where(h > 0.0, h, scal_ref[1] * h)

    h = jnp.dot(h.astype(jnp.bfloat16), w3_ref[...],
                preferred_element_type=jnp.float32) + b3_ref[...]
    h = jnp.where(h > 0.0, h, scal_ref[2] * h)

    # Scorer as a lane-dense (1, TN) row: contract channel dim of ws with the
    # channel dim of h (== ws @ h^T) so instances land on the lane axis and the
    # store is a full-width unmasked vst.
    s = jax.lax.dot_general(ws_ref[...], h.astype(jnp.bfloat16),
                            (((1,), (1,)), ((), ())),
                            preferred_element_type=jnp.float32)       # (1, TN)
    score_ref[...] = s + scal_ref[3]


def run_extractor_scorer(x2d, scal, w1t, b1, w2t, b2, w3t, b3, ws_row):
    n, f = x2d.shape
    h1 = w1t.shape[1]
    fc1p = w2t.shape[1]
    fc2p = w3t.shape[1]

    # Row tiling: single block when the bag is small (the common case).  For
    # large bags use tn=512: amortizes per-grid-step pipeline overhead and
    # fills the 256-wide MXU M on v6e/v7x; VMEM working set stays a few MB.
    if n <= 256:
        tn = int(pl.cdiv(n, 8) * 8)
    else:
        tn = 512
    n_pad = int(pl.cdiv(n, tn) * tn)
    if n_pad != n:
        x2d = jnp.pad(x2d, ((0, n_pad - n), (0, 0)))

    scores_row = pl.pallas_call(
        extractor_scorer_kernel,
        out_shape=jax.ShapeDtypeStruct((1, n_pad), jnp.float32),
        grid=(n_pad // tn,),
        in_specs=[
            pl.BlockSpec(memory_space=pltpu.MemorySpace.SMEM),      # scal (4,)
            pl.BlockSpec((tn, f),      lambda i: (i, 0)),           # x tile (F = full dim, no pad)
            # Constant block index -> Pallas fetches weights once even when
            # grid > 1 (large-bag path); VMEM headroom makes extra buffering moot.
            pl.BlockSpec((f, h1),      lambda i: (0, 0)),
            pl.BlockSpec((1, h1),      lambda i: (0, 0)),
            pl.BlockSpec((h1, fc1p),   lambda i: (0, 0)),
            pl.BlockSpec((1, fc1p),    lambda i: (0, 0)),
            pl.BlockSpec((fc1p, fc2p), lambda i: (0, 0)),
            pl.BlockSpec((1, fc2p),    lambda i: (0, 0)),
            pl.BlockSpec((1, fc2p),    lambda i: (0, 0)),           # ws_row
        ],
        out_specs=pl.BlockSpec((1, tn), lambda i: (0, i)),
        compiler_params=pltpu.CompilerParams(
            dimension_semantics=("parallel",)),
    )(scal, x2d, w1t, b1, w2t, b2, w3t, b3, ws_row)

    # CONTRACT: padded rows hold bias+PReLU garbage -- always slice to :n
    # before any selection / sort.
    return scores_row[0, :n]                                        # (N,)


# ----------------------------------------------------------------------------
# Full forward of NN_Model3b
# ----------------------------------------------------------------------------
def nn_model3b_forward(x, params, *, k_min_max=50, max_only=False):
    # x: (1, N, F)  ->  (N, F)
    n = x.shape[1]
    if max_only:
        assert n >= k_min_max, "MinMaxLayer needs N >= k_min_max"
    else:
        assert n >= 2 * k_min_max, "MinMaxLayer needs N >= 2*k_min_max"
    x2d = x.reshape(x.shape[1], x.shape[2]).astype(jnp.float32)

    att = run_extractor_scorer(
        x2d, params["scal"],
        params["w1t"], params["b1"],
        params["w2t"], params["b2"],
        params["w3t"], params["b3"],
        params["ws_row"],
    )                                                       # (N,)

    # MinMaxLayer + classifier collapsed to ONE sort + two tiny dots.  The
    # classifier weight halves were pre-flipped in prepare_params so the
    # ascending sort output is consumed directly (no top_k pair / flip / concat).
    sorted_asc = jnp.sort(att)
    k = k_min_max
    y = sorted_asc[-k:].reshape(1, k) @ params["wc_high"]   # top-k contribution
    if not max_only:
        y = y + sorted_asc[:k].reshape(1, k) @ params["wc_low"]  # bottom-k contribution
    y_prob = y + params["bc"]                               # (1, 1)
    return y_prob, y_prob


# ----------------------------------------------------------------------------
# Parameter init (raw shapes follow NN_Model3b.__init__) + padded/bf16 prep
# ----------------------------------------------------------------------------
def init_params(key, in_features, fc_1, fc_2, fc_output, k_infc):
    hidden0 = 512                                           # hardcoded in the module
    dims = [(in_features, hidden0), (hidden0, fc_1), (fc_1, fc_2), (fc_2, 1),
            (k_infc, fc_output)]
    keys = jax.random.split(key, 2 * len(dims))
    params = {}
    names = ["1", "2", "3", "s", "c"]
    for i, ((cin, cout), name) in enumerate(zip(dims, names)):
        bound = 1.0 / jnp.sqrt(cin)
        w = jax.random.uniform(keys[2 * i], (cin, cout), jnp.float32, -bound, bound)
        b = jax.random.uniform(keys[2 * i + 1], (1, cout), jnp.float32, -bound, bound)
        params[f"w{name}t"] = w                              # stored as (C_in, C_out)
        params[f"b{name}"] = b
    params["alphas"] = jnp.full((3,), 0.25, jnp.float32)     # PReLU default scalar slope
    return params


def prepare_params(raw, in_features, *, k_min_max=50, max_only=False):
    """Zero-pad FC dims to 128-multiples, cast weights to bf16 (halves weight DMA),
    pack scalars for SMEM, and pre-flip the classifier weight halves."""
    fc1 = raw["w2t"].shape[1]
    fc2 = raw["w3t"].shape[1]
    fc1_p, fc2_p = _rup(fc1), _rup(fc2)
    wdt = jnp.bfloat16

    p = {}
    p["w1t"] = raw["w1t"].astype(wdt)                        # (F, 512): no K padding needed
    p["b1"] = raw["b1"]
    p["w2t"] = jnp.pad(raw["w2t"], ((0, 0), (0, fc1_p - fc1))).astype(wdt)
    p["b2"] = jnp.pad(raw["b2"], ((0, 0), (0, fc1_p - fc1)))
    p["w3t"] = jnp.pad(raw["w3t"], ((0, fc1_p - fc1), (0, fc2_p - fc2))).astype(wdt)
    p["b3"] = jnp.pad(raw["b3"], ((0, 0), (0, fc2_p - fc2)))
    p["ws_row"] = jnp.pad(raw["wst"].T, ((0, 0), (0, fc2_p - fc2))).astype(wdt)  # (1, fc2_p)
    # PReLU slopes (3) + scorer bias (1) packed into SMEM scalars (f32).
    p["scal"] = jnp.concatenate([raw["alphas"], raw["bs"].reshape(1)]).astype(jnp.float32)

    # Classifier Linear(k_infc, 1): torch consumes [desc_top_k, desc_bottom_k].
    # Pre-flip each half so the forward can dot straight against the ASCENDING
    # sort slices (sorted_asc[-k:], sorted_asc[:k]) with no runtime flip/concat.
    wct = raw["wct"]                                         # (k_infc, 1)
    k = k_min_max
    p["wc_high"] = jnp.flip(wct[:k], axis=0)                 # pairs with sorted_asc[-k:]
    if not max_only:
        p["wc_low"] = jnp.flip(wct[k:2 * k], axis=0)         # pairs with sorted_asc[:k]
    p["bc"] = raw["bc"]
    return p


if __name__ == "__main__":
    # Small-but-consistent shapes: bag of N=128 instances (N >= 2*k_min_max=100
    # required by the hardcoded MinMax layer), in_features shrunk to 128.
    IN_FEATURES, FC_1, FC_2, FC_OUT = 128, 200, 100, 1
    K_MIN_MAX = 50
    K_INFC = 2 * K_MIN_MAX
    N_INSTANCES = 128

    key = jax.random.PRNGKey(0)
    k_x, k_p = jax.random.split(key)
    x = jax.random.normal(k_x, (1, N_INSTANCES, IN_FEATURES), jnp.float32)
    raw = init_params(k_p, IN_FEATURES, FC_1, FC_2, FC_OUT, K_INFC)
    params = prepare_params(raw, IN_FEATURES, k_min_max=K_MIN_MAX, max_only=False)

    fwd = jax.jit(functools.partial(nn_model3b_forward,
                                    k_min_max=K_MIN_MAX, max_only=False))
    y_prob, y_prob2 = fwd(x, params)
    jax.block_until_ready((y_prob, y_prob2))

    # Pure-JAX reference with the same bf16-weight math (PyTorch-order MinMax:
    # argsort descending, take [:k] and [-k:]) for a loose sanity check.
    def ref_forward(x, raw):
        x2d = x.reshape(x.shape[1], x.shape[2])
        def layer(h, w, b, a):
            h = jnp.dot(h.astype(jnp.bfloat16), w.astype(jnp.bfloat16),
                        preferred_element_type=jnp.float32) + b
            return jnp.where(h > 0.0, h, a * h)
        h = layer(x2d, raw["w1t"], raw["b1"], raw["alphas"][0])
        h = layer(h, raw["w2t"], raw["b2"], raw["alphas"][1])
        h = layer(h, raw["w3t"], raw["b3"], raw["alphas"][2])
        att = (jnp.dot(h.astype(jnp.bfloat16), raw["wst"].astype(jnp.bfloat16),
                       preferred_element_type=jnp.float32) + raw["bs"])[:, 0]
        order = jnp.argsort(-att)
        sel = jnp.concatenate([att[order[:K_MIN_MAX]], att[order[-K_MIN_MAX:]]])
        return sel.reshape(1, -1) @ raw["wct"] + raw["bc"]

    y_ref = ref_forward(x, raw)
    jax.block_until_ready(y_ref)

    assert y_prob.shape == (1, 1) and y_prob2.shape == (1, 1)
    assert bool(jnp.all(jnp.isfinite(y_prob)))
    assert jnp.allclose(y_prob, y_ref, rtol=5e-2, atol=5e-2), (y_prob, y_ref)
    print("KERNEL_OK")
</pallas_src>

<mosaic_0001>
module attributes {stable_mosaic.version = 11 : i64} {
  func.func @extractor_scorer_kernel(%arg0: i32, %arg1: memref<4xf32, #tpu.memory_space<smem>>, %arg2: memref<128x128xf32, #tpu.memory_space<vmem>>, %arg3: memref<128x512xbf16, #tpu.memory_space<vmem>>, %arg4: memref<1x512xf32, #tpu.memory_space<vmem>>, %arg5: memref<512x256xbf16, #tpu.memory_space<vmem>>, %arg6: memref<1x256xf32, #tpu.memory_space<vmem>>, %arg7: memref<256x128xbf16, #tpu.memory_space<vmem>>, %arg8: memref<1x128xf32, #tpu.memory_space<vmem>>, %arg9: memref<1x128xbf16, #tpu.memory_space<vmem>>, %arg10: memref<1x128xf32, #tpu.memory_space<vmem>>) attributes {dimension_semantics = [#tpu.dimension_semantics<parallel>], iteration_bounds = array<i64: 1>, scalar_prefetch = 0 : i64, scratch_operands = 0 : i64, tpu.core_type = #tpu.core_type<tc>, window_params = [{transform_indices = @transform_0, window_bounds = array<i64: 4>}, {transform_indices = @transform_1, window_bounds = array<i64: 128, 128>}, {pipeline_mode = #tpu.pipeline_mode<synchronous>, transform_indices = @transform_2, window_bounds = array<i64: 128, 512>}, {pipeline_mode = #tpu.pipeline_mode<synchronous>, transform_indices = @transform_3, window_bounds = array<i64: 1, 512>}, {pipeline_mode = #tpu.pipeline_mode<synchronous>, transform_indices = @transform_4, window_bounds = array<i64: 512, 256>}, {pipeline_mode = #tpu.pipeline_mode<synchronous>, transform_indices = @transform_5, window_bounds = array<i64: 1, 256>}, {pipeline_mode = #tpu.pipeline_mode<synchronous>, transform_indices = @transform_6, window_bounds = array<i64: 256, 128>}, {pipeline_mode = #tpu.pipeline_mode<synchronous>, transform_indices = @transform_7, window_bounds = array<i64: 1, 128>}, {pipeline_mode = #tpu.pipeline_mode<synchronous>, transform_indices = @transform_8, window_bounds = array<i64: 1, 128>}, {transform_indices = @transform_9, window_bounds = array<i64: 1, 128>}]} {
    %c0 = arith.constant 0 : index
    %c0_0 = arith.constant 0 : index
    %0 = vector.load %arg2[%c0, %c0_0] : memref<128x128xf32, #tpu.memory_space<vmem>>, vector<128x128xf32>
    %1 = arith.truncf %0 : vector<128x128xf32> to vector<128x128xbf16>
    %c0_1 = arith.constant 0 : index
    %c0_2 = arith.constant 0 : index
    %2 = vector.load %arg3[%c0_1, %c0_2] : memref<128x512xbf16, #tpu.memory_space<vmem>>, vector<128x512xbf16>
    %cst = arith.constant dense<0.000000e+00> : vector<128x512xf32>
    %3 = tpu.matmul %1, %2, %cst {dimension_numbers = #tpu.dot_dimension_numbers<[1], [0], [0], [1], [0, 0, 1, 1], [], []>} : vector<128x128xbf16>, vector<128x512xbf16>, vector<128x512xf32> -> vector<128x512xf32>
    %c0_3 = arith.constant 0 : index
    %c0_4 = arith.constant 0 : index
    %4 = vector.load %arg4[%c0_3, %c0_4] : memref<1x512xf32, #tpu.memory_space<vmem>>, vector<1x512xf32>
    %5 = vector.broadcast %4 : vector<1x512xf32> to vector<128x512xf32>
    %6 = arith.addf %3, %5 : vector<128x512xf32>
    %cst_5 = arith.constant 0.000000e+00 : f32
    %7 = vector.broadcast %cst_5 : f32 to vector<128x512xf32>
    %8 = arith.cmpf ogt, %6, %7 : vector<128x512xf32>
    %c0_6 = arith.constant 0 : index
    %9 = memref.load %arg1[%c0_6] : memref<4xf32, #tpu.memory_space<smem>>
    %10 = vector.broadcast %9 : f32 to vector<128x512xf32>
    %11 = arith.mulf %10, %6 : vector<128x512xf32>
    %12 = arith.select %8, %6, %11 : vector<128x512xi1>, vector<128x512xf32>
    %13 = arith.truncf %12 : vector<128x512xf32> to vector<128x512xbf16>
    %c0_7 = arith.constant 0 : index
    %c0_8 = arith.constant 0 : index
    %14 = vector.load %arg5[%c0_7, %c0_8] : memref<512x256xbf16, #tpu.memory_space<vmem>>, vector<512x256xbf16>
    %cst_9 = arith.constant dense<0.000000e+00> : vector<128x256xf32>
    %15 = tpu.matmul %13, %14, %cst_9 {dimension_numbers = #tpu.dot_dimension_numbers<[1], [0], [0], [1], [0, 0, 1, 1], [], []>} : vector<128x512xbf16>, vector<512x256xbf16>, vector<128x256xf32> -> vector<128x256xf32>
    %c0_10 = arith.constant 0 : index
    %c0_11 = arith.constant 0 : index
    %16 = vector.load %arg6[%c0_10, %c0_11] : memref<1x256xf32, #tpu.memory_space<vmem>>, vector<1x256xf32>
    %17 = vector.broadcast %16 : vector<1x256xf32> to vector<128x256xf32>
    %18 = arith.addf %15, %17 : vector<128x256xf32>
    %cst_12 = arith.constant 0.000000e+00 : f32
    %19 = vector.broadcast %cst_12 : f32 to vector<128x256xf32>
    %20 = arith.cmpf ogt, %18, %19 : vector<128x256xf32>
    %c1 = arith.constant 1 : index
    %21 = memref.load %arg1[%c1] : memref<4xf32, #tpu.memory_space<smem>>
    %22 = vector.broadcast %21 : f32 to vector<128x256xf32>
    %23 = arith.mulf %22, %18 : vector<128x256xf32>
    %24 = arith.select %20, %18, %23 : vector<128x256xi1>, vector<128x256xf32>
    %25 = arith.truncf %24 : vector<128x256xf32> to vector<128x256xbf16>
    %c0_13 = arith.constant 0 : index
    %c0_14 = arith.constant 0 : index
    %26 = vector.load %arg7[%c0_13, %c0_14] : memref<256x128xbf16, #tpu.memory_space<vmem>>, vector<256x128xbf16>
    %cst_15 = arith.constant dense<0.000000e+00> : vector<128x128xf32>
    %27 = tpu.matmul %25, %26, %cst_15 {dimension_numbers = #tpu.dot_dimension_numbers<[1], [0], [0], [1], [0, 0, 1, 1], [], []>} : vector<128x256xbf16>, vector<256x128xbf16>, vector<128x128xf32> -> vector<128x128xf32>
    %c0_16 = arith.constant 0 : index
    %c0_17 = arith.constant 0 : index
    %28 = vector.load %arg8[%c0_16, %c0_17] : memref<1x128xf32, #tpu.memory_space<vmem>>, vector<1x128xf32>
    %29 = vector.broadcast %28 : vector<1x128xf32> to vector<128x128xf32>
    %30 = arith.addf %27, %29 : vector<128x128xf32>
    %cst_18 = arith.constant 0.000000e+00 : f32
    %31 = vector.broadcast %cst_18 : f32 to vector<128x128xf32>
    %32 = arith.cmpf ogt, %30, %31 : vector<128x128xf32>
    %c2 = arith.constant 2 : index
    %33 = memref.load %arg1[%c2] : memref<4xf32, #tpu.memory_space<smem>>
    %34 = vector.broadcast %33 : f32 to vector<128x128xf32>
    %35 = arith.mulf %34, %30 : vector<128x128xf32>
    %36 = arith.select %32, %30, %35 : vector<128x128xi1>, vector<128x128xf32>
    %c0_19 = arith.constant 0 : index
    %c0_20 = arith.constant 0 : index
    %37 = vector.load %arg9[%c0_19, %c0_20] : memref<1x128xbf16, #tpu.memory_space<vmem>>, vector<1x128xbf16>
    %38 = arith.truncf %36 : vector<128x128xf32> to vector<128x128xbf16>
    %cst_21 = arith.constant dense<0.000000e+00> : vector<1x128xf32>
    %39 = tpu.matmul %37, %38, %cst_21 {dimension_numbers = #tpu.dot_dimension_numbers<[1], [1], [0], [0], [0, 0, 1, 0], [], []>} : vector<1x128xbf16>, vector<128x128xbf16>, vector<1x128xf32> -> vector<1x128xf32>
    %c3 = arith.constant 3 : index
    %40 = memref.load %arg1[%c3] : memref<4xf32, #tpu.memory_space<smem>>
    %41 = vector.broadcast %40 : f32 to vector<1x128xf32>
    %42 = arith.addf %39, %41 : vector<1x128xf32>
    %c0_22 = arith.constant 0 : index
    %c0_23 = arith.constant 0 : index
    %43 = vector.load %arg10[%c0_22, %c0_23] : memref<1x128xf32, #tpu.memory_space<vmem>>, vector<1x128xf32>
    tpu.vector_store %arg10[%c0_22, %c0_23], %42 {strides = array<i32>} : memref<1x128xf32, #tpu.memory_space<vmem>>, vector<1x128xf32>,
    return
  }
  func.func @transform_0(%arg0: i32) -> i32 {
    %c0_i32 = arith.constant 0 : i32
    %c0_i32_0 = arith.constant 0 : i32
    return %c0_i32 : i32
  }
  func.func @transform_1(%arg0: i32) -> (i32, i32) {
    %c0_i32 = arith.constant 0 : i32
    %c0_i32_0 = arith.constant 0 : i32
    return %arg0, %c0_i32 : i32, i32
  }
  func.func @transform_2(%arg0: i32) -> (i32, i32) {
    %c0_i32 = arith.constant 0 : i32
    %c0_i32_0 = arith.constant 0 : i32
    %c0_i32_1 = arith.constant 0 : i32
    return %c0_i32, %c0_i32_0 : i32, i32
  }
  func.func @transform_3(%arg0: i32) -> (i32, i32) {
    %c0_i32 = arith.constant 0 : i32
    %c0_i32_0 = arith.constant 0 : i32
    %c0_i32_1 = arith.constant 0 : i32
    return %c0_i32, %c0_i32_0 : i32, i32
  }
  func.func @transform_4(%arg0: i32) -> (i32, i32) {
    %c0_i32 = arith.constant 0 : i32
    %c0_i32_0 = arith.constant 0 : i32
    %c0_i32_1 = arith.constant 0 : i32
    return %c0_i32, %c0_i32_0 : i32, i32
  }
  func.func @transform_5(%arg0: i32) -> (i32, i32) {
    %c0_i32 = arith.constant 0 : i32
    %c0_i32_0 = arith.constant 0 : i32
    %c0_i32_1 = arith.constant 0 : i32
    return %c0_i32, %c0_i32_0 : i32, i32
  }
  func.func @transform_6(%arg0: i32) -> (i32, i32) {
    %c0_i32 = arith.constant 0 : i32
    %c0_i32_0 = arith.constant 0 : i32
    %c0_i32_1 = arith.constant 0 : i32
    return %c0_i32, %c0_i32_0 : i32, i32
  }
  func.func @transform_7(%arg0: i32) -> (i32, i32) {
    %c0_i32 = arith.constant 0 : i32
    %c0_i32_0 = arith.constant 0 : i32
    %c0_i32_1 = arith.constant 0 : i32
    return %c0_i32, %c0_i32_0 : i32, i32
  }
  func.func @transform_8(%arg0: i32) -> (i32, i32) {
    %c0_i32 = arith.constant 0 : i32
    %c0_i32_0 = arith.constant 0 : i32
    %c0_i32_1 = arith.constant 0 : i32
    return %c0_i32, %c0_i32_0 : i32, i32
  }
  func.func @transform_9(%arg0: i32) -> (i32, i32) {
    %c0_i32 = arith.constant 0 : i32
    %c0_i32_0 = arith.constant 0 : i32
    return %c0_i32, %arg0 : i32, i32
  }
}

</mosaic_0001>

<bundles_post_ra>
// kernel: nn_model3b_forward.1
= control target key start
LH: loop header
LB: loop body
LE: loop exit
PB: predicated region body
PF: predicated region fallthrough
CT: control target
= control target key end

     0   :  { %14 = vsyncpa [#allocation4], 0  ;;  %s3062_s0 = inlined_call_operand.vmem [shape: f32[4], index: 0, kind: input, shape index: {}]   ;;  %s3063_s1 = inlined_call_operand.hbm [shape: f32[128,128], index: 1, kind: input, shape index: {}]   ;;  %s3064_s2 = inlined_call_operand.hbm [shape: bf16[128,512], index: 2, kind: input, shape index: {}]   ;;  %s3065_s3 = inlined_call_operand.vmem [shape: f32[1,512], index: 3, kind: input, shape index: {}]   ;;  %s3066_s4 = inlined_call_operand.hbm [shape: bf16[512,256], index: 4, kind: input, shape index: {}]   ;;  %s3067_s5 = inlined_call_operand.vmem [shape: f32[1,256], index: 5, kind: input, shape index: {}]   ;;  %s3068_s6 = inlined_call_operand.hbm [shape: bf16[256,128], index: 6, kind: input, shape index: {}]   ;;  %s3069_s7 = inlined_call_operand.vmem [shape: f32[1,128], index: 7, kind: input, shape index: {}]   ;;  %s3070_s8 = inlined_call_operand.vmem [shape: bf16[1,128], index: 8, kind: input, shape index: {}]   ;;  %s3071_s9 = inlined_call_operand.vmem [shape: f32[1,128], index: 9, kind: output, shape index: {}]  }
   0x1   :  { %15 = vsyncpa [#allocation3], 0 }
   0x2   :  { %16 = vsyncpa [#allocation7], 0 }
   0x3   :  { %17 = vsyncpa [#allocation10], 0  ;;  %s2424_s30 = smov [#allocation6]   ;;  %s24_s13 = sshll.u32 %s3062_s0, 4  ;;  %s25_s13 = int_to_ptr.vmem [resolvable:$true] %s24_s13 }
   0x4   :  { %s45_s10 = sshll.u32 %s2424_s30, 4  ;;  %s2316_s16 = scalar_lea.hbm %s3064_s2, 4096  ;;  %s46_s10 = int_to_ptr.vmem [resolvable:$true] %s45_s10 }
   0x5   :  { %p2317_p0 = scmp.ne.s32.totalorder %s3064_s2, %s2316_s16  ;;  %p2320_p1 = scmp.lt.u32.totalorder %s2316_s16, %s3064_s2 }
   0x7   :  { %p2322_p2 = pnand %p2320_p1, %p2317_p0 }
   0x9   :  { %2325 = shalt.err (!%p2322_p2)
}
   0xa   :  { %s2326_s21 = scalar_lea.vmem %s46_s10, 4096  ;;  %p2331_p4 = scmp.lt.s32.totalorder %s46_s10, %s46_s10 }
   0xb   :  { %p2327_p3 = scmp.ne.s32.totalorder %s46_s10, %s2326_s21  ;;  %p2332_p5 = scmp.lt.s32.totalorder %s2326_s21, %s2326_s21 }
   0xd   :  { %p2333_p6 = por %p2332_p5, %p2331_p4 }
   0xf   :  { %p2334_p7 = pnand %p2333_p6, %p2327_p3 }
  0x11   :  { %2337 = shalt.err (!%p2334_p7)
}
  0x12   :  { %s2425_s0 = smov 256   ;;  %s2426_s22 = smov 16  }
  0x13   :  { %51 = dma.hbm_to_vmem [thread:$0]  %s3064_s2, 4096, %s46_s10, [#allocation7], %s2425_s0, %s2425_s0, %s2426_s22  }
  0x14   :  { %s2338_s25 = scalar_lea.vmem %s25_s13, 16  ;;  %p2343_p9 = scmp.lt.s32.totalorder %s25_s13, %s25_s13 }
  0x15   :  { %p2339_p8 = scmp.ne.s32.totalorder %s25_s13, %s2338_s25  ;;  %p2344_p10 = scmp.lt.s32.totalorder %s2338_s25, %s2338_s25 }
  0x17   :  { %p2345_p11 = por %p2344_p10, %p2343_p9 }
  0x19   :  { %p2346_p12 = pnand %p2345_p11, %p2339_p8 }
  0x1b   :  { %2349 = shalt.err (!%p2346_p12)
}
  0x1c   :  { %s2427_s26 = smov [#allocation2]   ;;  %s2428_s27 = smov [#allocation5]  }
  0x1d   :  { %27 = dma.vmem_to_smem %s25_s13, 16, %s2427_s26, [#allocation4]  }
  0x1e   :  { %s33_s28 = sshll.u32 %s2428_s27, 4  ;;  %s2350_s11 = scalar_lea.hbm %s3063_s1, 2048  ;;  %s34_s28 = int_to_ptr.vmem [resolvable:$true] %s33_s28 }
  0x1f   :  { %p2351_p13 = scmp.ne.s32.totalorder %s3063_s1, %s2350_s11  ;;  %p2354_p0 = scmp.lt.u32.totalorder %s2350_s11, %s3063_s1 }
  0x21   :  { %p2356_p1 = pnand %p2354_p0, %p2351_p13 }
  0x23   :  { %2359 = shalt.err (!%p2356_p1)
}
  0x24   :  { %s2360_s15 = scalar_lea.vmem %s34_s28, 2048  ;;  %p2365_p3 = scmp.lt.s32.totalorder %s34_s28, %s34_s28 }
  0x25   :  { %p2361_p2 = scmp.ne.s32.totalorder %s34_s28, %s2360_s15  ;;  %p2366_p4 = scmp.lt.s32.totalorder %s2360_s15, %s2360_s15 }
  0x27   :  { %p2367_p5 = por %p2366_p4, %p2365_p3 }
  0x29   :  { %p2368_p6 = pnand %p2367_p5, %p2361_p2 }
  0x2b   :  { %2371 = shalt.err (!%p2368_p6)
}
  0x2c   :  { %s2429_s13 = smov 128   ;;  %s2430_s16 = smov 8  }
  0x2d   :  { %39 = dma.hbm_to_vmem [thread:$0]  %s3063_s1, 2048, %s34_s28, [#allocation3], %s2429_s13, %s2429_s13, %s2430_s16  }
  0x2e   :  { %s2431_s19 = smov [#allocation8]   ;;  %s2432_s21 = smov [#allocation9]  }
  0x2f   :  { %s59_s20 = sshll.u32 %s2431_s19, 4  ;;  %s73_s0 = sshll.u32 %s2432_s21, 4  ;;  %s60_s20 = int_to_ptr.vmem [resolvable:$true] %s59_s20  ;;  %s74_s0 = int_to_ptr.vmem [resolvable:$true] %s73_s0 }
  0x30   :  { %s2372_s24 = scalar_lea.hbm %s3066_s4, 8192 }
  0x31   :  { %p2373_p7 = scmp.ne.s32.totalorder %s3066_s4, %s2372_s24  ;;  %p2376_p8 = scmp.lt.u32.totalorder %s2372_s24, %s3066_s4 }
  0x33   :  { %p2378_p9 = pnand %p2376_p8, %p2373_p7 }
  0x35   :  { %2381 = shalt.err (!%p2378_p9)
}
  0x36   :  { %s2382_s1 = scalar_lea.vmem %s60_s20, 8192  ;;  %p2387_p11 = scmp.lt.s32.totalorder %s60_s20, %s60_s20 }
  0x37   :  { %p2383_p10 = scmp.ne.s32.totalorder %s60_s20, %s2382_s1  ;;  %p2388_p12 = scmp.lt.s32.totalorder %s2382_s1, %s2382_s1 }
  0x39   :  { %p2389_p13 = por %p2388_p12, %p2387_p11 }
  0x3b   :  { %p2390_p0 = pnand %p2389_p13, %p2383_p10 }
  0x3d   :  { %2393 = shalt.err (!%p2390_p0)
}
  0x3e   :  { %65 = dma.hbm_to_vmem [thread:$0]  %s3066_s4, 8192, %s60_s20, [#allocation7], %s2429_s13, %s2429_s13, %s2430_s16  }
  0x3f   :  { %s2394_s14 = scalar_lea.hbm %s3068_s6, 2048 }
  0x40   :  { %p2395_p1 = scmp.ne.s32.totalorder %s3068_s6, %s2394_s14  ;;  %p2398_p2 = scmp.lt.u32.totalorder %s2394_s14, %s3068_s6 }
  0x42   :  { %p2400_p3 = pnand %p2398_p2, %p2395_p1 }
  0x44   :  { %2403 = shalt.err (!%p2400_p3)
}
  0x45   :  { %s2404_s18 = scalar_lea.vmem %s74_s0, 2048  ;;  %p2409_p5 = scmp.lt.s32.totalorder %s74_s0, %s74_s0 }
  0x46   :  { %p2405_p4 = scmp.ne.s32.totalorder %s74_s0, %s2404_s18  ;;  %p2410_p6 = scmp.lt.s32.totalorder %s2404_s18, %s2404_s18 }
  0x48   :  { %p2411_p7 = por %p2410_p6, %p2409_p5 }
  0x4a   :  { %p2412_p8 = pnand %p2411_p7, %p2405_p4 }
  0x4c   :  { %2415 = shalt.err (!%p2412_p8)
}
  0x4d   :  { %s2433_s4 = smov 64   ;;  %s2434_s13 = smov 4  }
  0x4e   :  { %79 = dma.hbm_to_vmem [thread:$0]  %s3068_s6, 2048, %s74_s0, [#allocation10], %s2433_s4, %s2433_s4, %s2434_s13  }
  0x4f   :  { %2416 = dma.done.wait [#allocation4], 16  }
  0x50   :  { %2417 = vsyncadd [#allocation4], 4294967280 }
  0x51   :  { %2418 = dma.done.wait [#allocation3], 2048  }
  0x52   :  { %2419 = vsyncadd [#allocation3], 4294965248 }
  0x53   :  { %2420 = dma.done.wait [#allocation7], 12288  }
  0x54   :  { %2421 = vsyncadd [#allocation7], 4294955008 }
  0x55   :  { %2422 = dma.done.wait [#allocation10], 2048  }
  0x56   :  { %2423 = vsyncadd [#allocation10], 4294965248 }
  0x57   :  { %99 = sfence }
  0x58   :  { %v2156_v0 = vld [vmem:[#allocation6 + $0x4] ss:$16 sps:$4 sm:$0xff]   ;;  %v2158_v1 = vld [vmem:[#allocation6] ss:$16 sps:$4 sm:$0xff]   ;;  %v2435_v2 = vmov 0   ;;  %v102_v27 = vld [vmem:[#allocation5 + $0x8] sm:$0xff] }
  0x59   :  { %371 = vmatprep.mubr.bf16.mxu0 %v2435_v2  ;;  %484 = vmatprep.mubr.bf16.mxu1 %v2435_v2  ;;  %v2159_v3 = vld [vmem:[#allocation6 + $0x24] ss:$16 sps:$4 sm:$0xff]   ;;  %v2161_v4 = vld [vmem:[#allocation6 + $0x20] ss:$16 sps:$4 sm:$0xff]   ;;  %v2180_v10 = vld [vmem:[#allocation6 + $0xc] ss:$16 sps:$4 sm:$0xff]  }
  0x5a   :  { %339 = vmatprep.subr.bf16.mxu0 %v2156_v0  ;;  %v2162_v5 = vld [vmem:[#allocation6 + $0x44] ss:$16 sps:$4 sm:$0xff]   ;;  %v2164_v6 = vld [vmem:[#allocation6 + $0x40] ss:$16 sps:$4 sm:$0xff]   ;;  %v2182_v11 = vld [vmem:[#allocation6 + $0x8] ss:$16 sps:$4 sm:$0xff]   ;;  %452 = vmatprep.subr.bf16.mxu1 %v2180_v10 }
  0x5b   :  { %340 = vmatpush1.bf16.msra.mxu0 %v2158_v1  ;;  %v2165_v7 = vld [vmem:[#allocation6 + $0x64] ss:$16 sps:$4 sm:$0xff]   ;;  %v2167_v8 = vld [vmem:[#allocation6 + $0x60] ss:$16 sps:$4 sm:$0xff]   ;;  %v2183_v13 = vld [vmem:[#allocation6 + $0x2c] ss:$16 sps:$4 sm:$0xff]   ;;  %453 = vmatpush1.bf16.msra.mxu1 %v2182_v11 }
  0x5c   :  { %341 = vmatprep.subr.bf16.mxu0 %v2159_v3  ;;  %v2168_v9 = vld [vmem:[#allocation6 + $0x84] ss:$16 sps:$4 sm:$0xff]   ;;  %v2170_v12 = vld [vmem:[#allocation6 + $0x80] ss:$16 sps:$4 sm:$0xff]   ;;  %v2185_v15 = vld [vmem:[#allocation6 + $0x28] ss:$16 sps:$4 sm:$0xff]   ;;  %454 = vmatprep.subr.bf16.mxu1 %v2183_v13 }
  0x5d   :  { %v2171_v14 = vld [vmem:[#allocation6 + $0xa4] ss:$16 sps:$4 sm:$0xff]   ;;  %v2186_v16 = vld [vmem:[#allocation6 + $0x4c] ss:$16 sps:$4 sm:$0xff]   ;;  %v2173_v17 = vld [vmem:[#allocation6 + $0xa0] ss:$16 sps:$4 sm:$0xff]  }
  0x5e   :  { %v2174_v18 = vld [vmem:[#allocation6 + $0xc4] ss:$16 sps:$4 sm:$0xff]   ;;  %v2188_v19 = vld [vmem:[#allocation6 + $0x48] ss:$16 sps:$4 sm:$0xff]   ;;  %v2189_v20 = vld [vmem:[#allocation6 + $0x6c] ss:$16 sps:$4 sm:$0xff]  }
  0x5f   :  { %342 = vmatpush1.bf16.msra.mxu0 %v2161_v4  ;;  %455 = vmatpush1.bf16.msra.mxu1 %v2185_v15  ;;  %v2176_v21 = vld [vmem:[#allocation6 + $0xc0] ss:$16 sps:$4 sm:$0xff]   ;;  %v2177_v22 = vld [vmem:[#allocation6 + $0xe4] ss:$16 sps:$4 sm:$0xff]   ;;  %v2191_v23 = vld [vmem:[#allocation6 + $0x68] ss:$16 sps:$4 sm:$0xff]  }
  0x60   :  { %343 = vmatprep.subr.bf16.mxu0 %v2162_v5  ;;  %456 = vmatprep.subr.bf16.mxu1 %v2186_v16  ;;  %v2179_v24 = vld [vmem:[#allocation6 + $0xe0] ss:$16 sps:$4 sm:$0xff]   ;;  %v2192_v25 = vld [vmem:[#allocation6 + $0x8c] ss:$16 sps:$4 sm:$0xff]   ;;  %v2194_v29 = vld [vmem:[#allocation6 + $0x88] ss:$16 sps:$4 sm:$0xff]  }
  0x61   :  { %v101_v26 = vld [vmem:[#allocation5] sm:$0xff]  ;;  %v2195_v31 = vld [vmem:[#allocation6 + $0xac] ss:$16 sps:$4 sm:$0xff]   ;;  %v2197_v34 = vld [vmem:[#allocation6 + $0xa8] ss:$16 sps:$4 sm:$0xff]   ;;  %s629_s6 = sld [smem:[#allocation2]] }
  0x62   :  { %v2206_v28 = vld [vmem:[#allocation8 + $0x4] ss:$8 sps:$4 sm:$0xff]   ;;  %v117_v30 = vpack.c.bf16 %v102_v27, %v101_v26  ;;  %v2204_v32 = vld [vmem:[#allocation8] ss:$8 sps:$4 sm:$0xff]   ;;  %v2209_v33 = vld [vmem:[#allocation8 + $0x14] ss:$8 sps:$4 sm:$0xff]   ;;  %v159_v27 = vlaneseq }
  0x63   :  { %344 = vmatpush1.bf16.msra.mxu0 %v2164_v6  ;;  %457 = vmatpush1.bf16.msra.mxu1 %v2188_v19  ;;  %v103_v35 = vld [vmem:[#allocation5 + $0x10] sm:$0xff]  ;;  %v2198_v36 = vld [vmem:[#allocation6 + $0xcc] ss:$16 sps:$4 sm:$0xff]   ;;  %v2200_v40 = vld [vmem:[#allocation6 + $0xc8] ss:$16 sps:$4 sm:$0xff]   ;;  %s1984_s26 = sld [smem:[#allocation2 + $0x3]] }
  0x64   :  { %345 = vmatprep.subr.bf16.mxu0 %v2165_v7  ;;  %458 = vmatprep.subr.bf16.mxu1 %v2189_v20  ;;  %v104_v37 = vld [vmem:[#allocation5 + $0x18] sm:$0xff]  ;;  %v2212_v39 = vld [vmem:[#allocation8 + $0x24] ss:$8 sps:$4 sm:$0xff]   ;;  %v2210_v43 = vld [vmem:[#allocation8 + $0x20] ss:$8 sps:$4 sm:$0xff]  }
  0x65   :  { %v2207_v38 = vld [vmem:[#allocation8 + $0x10] ss:$8 sps:$4 sm:$0xff]   ;;  %v118_v41 = vpack.c.bf16 %v104_v37, %v103_v35  ;;  %v2201_v42 = vld [vmem:[#allocation6 + $0xec] ss:$16 sps:$4 sm:$0xff]   ;;  %v105_v46 = vld [vmem:[#allocation5 + $0x20] sm:$0xff] }
  0x66   :  { %v2215_v44 = vld [vmem:[#allocation8 + $0x34] ss:$8 sps:$4 sm:$0xff]   ;;  %v2203_v45 = vld [vmem:[#allocation6 + $0xe8] ss:$16 sps:$4 sm:$0xff]   ;;  %v2218_v49 = vld [vmem:[#allocation8 + $0x44] ss:$8 sps:$4 sm:$0xff]  }
  0x67   :  { %346 = vmatpush1.bf16.msra.mxu0 %v2167_v8  ;;  %459 = vmatpush1.bf16.msra.mxu1 %v2191_v23  ;;  %v106_v47 = vld [vmem:[#allocation5 + $0x28] sm:$0xff]  ;;  %v2213_v48 = vld [vmem:[#allocation8 + $0x30] ss:$8 sps:$4 sm:$0xff]   ;;  %v2221_v52 = vld [vmem:[#allocation8 + $0x54] ss:$8 sps:$4 sm:$0xff]  }
  0x68   :  { %347 = vmatprep.subr.bf16.mxu0 %v2168_v9  ;;  %460 = vmatprep.subr.bf16.mxu1 %v2192_v25  ;;  %v2216_v50 = vld [vmem:[#allocation8 + $0x40] ss:$8 sps:$4 sm:$0xff]   ;;  %v119_v51 = vpack.c.bf16 %v106_v47, %v105_v46  ;;  %v107_v53 = vld [vmem:[#allocation5 + $0x30] sm:$0xff]  ;;  %v108_v54 = vld [vmem:[#allocation5 + $0x38] sm:$0xff] }
  0x69   :  { %v2219_v55 = vld [vmem:[#allocation8 + $0x50] ss:$8 sps:$4 sm:$0xff]   ;;  %v2224_v56 = vld [vmem:[#allocation8 + $0x64] ss:$8 sps:$4 sm:$0xff]   ;;  %v2222_v57 = vld [vmem:[#allocation8 + $0x60] ss:$8 sps:$4 sm:$0xff]   ;;  %v120_v58 = vpack.c.bf16 %v108_v54, %v107_v53 }
  0x6a   :  { %v2227_v59 = vld [vmem:[#allocation8 + $0x74] ss:$8 sps:$4 sm:$0xff]   ;;  %v109_v60 = vld [vmem:[#allocation5 + $0x40] sm:$0xff]  ;;  %v110_v61 = vld [vmem:[#allocation5 + $0x48] sm:$0xff] }
  0x6b   :  { %348 = vmatpush1.bf16.msra.mxu0 %v2170_v12  ;;  %461 = vmatpush1.bf16.msra.mxu1 %v2194_v29  ;;  %v2225_v62 = vld [vmem:[#allocation8 + $0x70] ss:$8 sps:$4 sm:$0xff]   ;;  %v2230_v63 = vld [vmem:[#allocation8 + $0x84] ss:$8 sps:$4 sm:$0xff]   ;;  %v2228_v0 = vld [vmem:[#allocation8 + $0x80] ss:$8 sps:$4 sm:$0xff]   ;;  %v121_v1 = vpack.c.bf16 %v110_v61, %v109_v60 }
  0x6c   :  { %349 = vmatprep.subr.bf16.mxu0 %v2171_v14  ;;  %462 = vmatprep.subr.bf16.mxu1 %v2195_v31  ;;  %v2233_v3 = vld [vmem:[#allocation8 + $0x94] ss:$8 sps:$4 sm:$0xff]   ;;  %v2231_v6 = vld [vmem:[#allocation8 + $0x90] ss:$8 sps:$4 sm:$0xff]   ;;  %v2236_v7 = vld [vmem:[#allocation8 + $0xa4] ss:$8 sps:$4 sm:$0xff]  }
  0x6d   :  { %v111_v4 = vld [vmem:[#allocation5 + $0x50] sm:$0xff]  ;;  %v112_v5 = vld [vmem:[#allocation5 + $0x58] sm:$0xff]  ;;  %v2234_v9 = vld [vmem:[#allocation8 + $0xa0] ss:$8 sps:$4 sm:$0xff]  }
  0x6e   :  { %v122_v8 = vpack.c.bf16 %v112_v5, %v111_v4  ;;  %v2239_v10 = vld [vmem:[#allocation8 + $0xb4] ss:$8 sps:$4 sm:$0xff]   ;;  %v113_v11 = vld [vmem:[#allocation5 + $0x60] sm:$0xff]  ;;  %v114_v12 = vld [vmem:[#allocation5 + $0x68] sm:$0xff] }
  0x6f   :  { %350 = vmatpush1.bf16.msra.mxu0 %v2173_v17  ;;  %463 = vmatpush1.bf16.msra.mxu1 %v2197_v34  ;;  %v2237_v13 = vld [vmem:[#allocation8 + $0xb0] ss:$8 sps:$4 sm:$0xff]   ;;  %v2242_v14 = vld [vmem:[#allocation8 + $0xc4] ss:$8 sps:$4 sm:$0xff]   ;;  %v123_v15 = vpack.c.bf16 %v114_v12, %v113_v11  ;;  %v2240_v16 = vld [vmem:[#allocation8 + $0xc0] ss:$8 sps:$4 sm:$0xff]   ;;  %v2574_v34 = vstv %s629_s6 }
  0x70   :  { %351 = vmatprep.subr.bf16.mxu0 %v2174_v18  ;;  %464 = vmatprep.subr.bf16.mxu1 %v2198_v36  ;;  %v115_v17 = vld [vmem:[#allocation5 + $0x70] sm:$0xff]  ;;  %v116_v18 = vld [vmem:[#allocation5 + $0x78] sm:$0xff]  ;;  %v2246_v23 = vld [vmem:[#allocation8 + $0xe0] ss:$8 sps:$4 sm:$0xff]  }
  0x71   :  { %v124_v19 = vpack.c.bf16 %v116_v18, %v115_v17  ;;  %v2245_v20 = vld [vmem:[#allocation8 + $0xd4] ss:$8 sps:$4 sm:$0xff]   ;;  %v2249_v25 = vld [vmem:[#allocation8 + $0xf0] ss:$8 sps:$4 sm:$0xff]   ;;  %v2254_v26 = vld [vmem:[#allocation8 + $0x104] ss:$8 sps:$4 sm:$0xff]  }
  0x72   :  { %v2561_v29 = vld [vmem:[%s3065_s3] sm:$0xf]  ;;  %v2302_v46 = vld [vmem:[#allocation9 + $0x48] sm:$0xff]   ;;  %v2255_v12 = vld [vmem:[#allocation8 + $0x110] ss:$8 sps:$4 sm:$0xff]   ;;  %s1965_s3 = sld [smem:[#allocation2 + $0x1]] }
  0x73   :  { %352 = vmatpush1.bf16.msra.mxu0 %v2176_v21  ;;  %465 = vmatpush1.bf16.msra.mxu1 %v2200_v40  ;;  %v2243_v21 = vld [vmem:[#allocation8 + $0xd0] ss:$8 sps:$4 sm:$0xff]   ;;  %v2252_v61 = vld [vmem:[#allocation8 + $0x100] ss:$8 sps:$4 sm:$0xff]  }
  0x74   :  { %353 = vmatprep.subr.bf16.mxu0 %v2177_v22  ;;  %466 = vmatprep.subr.bf16.mxu1 %v2201_v42  ;;  %v2248_v22 = vld [vmem:[#allocation8 + $0xe4] ss:$8 sps:$4 sm:$0xff]  }
  0x77   :  { %354 = vmatpush1.bf16.msra.mxu0 %v2179_v24  ;;  %467 = vmatpush1.bf16.msra.mxu1 %v2203_v45  ;;  %v2251_v24 = vld [vmem:[#allocation8 + $0xf4] ss:$8 sps:$4 sm:$0xff]   ;;  %v2301_v45 = vld [vmem:[#allocation9] sm:$0xff]  }
  0x78   :  { %1187 = vmatprep.subr.bf16.mxu0 %v2206_v28  ;;  %v2555_v28 = vshrl.u32 %v159_v27, 7  ;;  %v2308_v27 = vld [vmem:[#allocation9 + $0x60] sm:$0xff]  }
  0x7a   :  { %372 = vmatmul.mubr.bf16.vlgmr.msra.gmra.mrb[0].mxu0 %v117_v30  ;;  %485 = vmatmul.mubr.bf16.vlgmr.msra.gmra.mrb[0].mxu1 %v117_v30  ;;  %v165_v30 = vsub.s32 1, %v2555_v28 }
  0x7b   :  { %381 = vmatprep.mubr.bf16.mxu0 %v2435_v2  ;;  %1188 = vmatpush1.bf16.msra.mxu0 %v2204_v32 }
  0x7c   :  { %1189 = vmatprep.subr.bf16.mxu0 %v2209_v33  ;;  %494 = vmatprep.mubr.bf16.mxu1 %v2435_v2  ;;  %v2572_v32 = vrot.slane %v2561_v29, %v165_v30 }
  0x7f   :  { %1190 = vmatpush1.bf16.msra.mxu0 %v2207_v38 }
  0x80   :  { %1191 = vmatprep.subr.bf16.mxu0 %v2212_v39 }
  0x82   :  { %382 = vmatmul.mubr.bf16.gmra.mrb[4].mxu0 %v118_v41  ;;  %495 = vmatmul.mubr.bf16.gmra.mrb[4].mxu1 %v118_v41 }
  0x83   :  { %391 = vmatprep.mubr.bf16.mxu0 %v2435_v2  ;;  %1192 = vmatpush1.bf16.msra.mxu0 %v2210_v43 }
  0x84   :  { %1193 = vmatprep.subr.bf16.mxu0 %v2215_v44  ;;  %504 = vmatprep.mubr.bf16.mxu1 %v2435_v2  ;;  %v2300_v44 = vld [vmem:[#allocation9 + $0x40] sm:$0xff]  }
  0x85   :  { %1985 = vmatprep.subr.bf16.mxu1 %v2300_v44 }
  0x86   :  { %1986 = vmatpush3.bf16.msra.mxu1 %v2301_v45 }
  0x87   :  { %1194 = vmatpush1.bf16.msra.mxu0 %v2213_v48  ;;  %1987 = vmatprep.subr.bf16.mxu1 %v2302_v46 }
  0x88   :  { %1195 = vmatprep.subr.bf16.mxu0 %v2218_v49 }
  0x8a   :  { %392 = vmatmul.mubr.bf16.gmra.mrb[8].mxu0 %v119_v51  ;;  %505 = vmatmul.mubr.bf16.gmra.mrb[8].mxu1 %v119_v51  ;;  %v169_v51 = vsub.s32 2, %v2555_v28 }
  0x8b   :  { %401 = vmatprep.mubr.bf16.mxu0 %v2435_v2  ;;  %1196 = vmatpush1.bf16.msra.mxu0 %v2216_v50 }
  0x8c   :  { %1197 = vmatprep.subr.bf16.mxu0 %v2221_v52  ;;  %514 = vmatprep.mubr.bf16.mxu1 %v2435_v2  ;;  %v2303_v52 = vld [vmem:[#allocation9 + $0x8] sm:$0xff]  }
  0x8d   :  { %1988 = vmatpush3.bf16.msra.mxu1 %v2303_v52  ;;  %v2261_v52 = vld [vmem:[#allocation8 + $0x130] ss:$8 sps:$4 sm:$0xff]  }
  0x8f   :  { %1198 = vmatpush1.bf16.msra.mxu0 %v2219_v55 }
  0x90   :  { %1199 = vmatprep.subr.bf16.mxu0 %v2224_v56 }
  0x92   :  { %402 = vmatmul.mubr.bf16.gmra.mrb[12].mxu0 %v120_v58  ;;  %515 = vmatmul.mubr.bf16.gmra.mrb[12].mxu1 %v120_v58 }
  0x93   :  { %411 = vmatprep.mubr.bf16.mxu0 %v2435_v2  ;;  %1200 = vmatpush1.bf16.msra.mxu0 %v2222_v57  ;;  %v2304_v57 = vld [vmem:[#allocation9 + $0x50] sm:$0xff]  }
  0x94   :  { %1201 = vmatprep.subr.bf16.mxu0 %v2227_v59  ;;  %524 = vmatprep.mubr.bf16.mxu1 %v2435_v2 }
  0x95   :  { %1989 = vmatprep.subr.bf16.mxu1 %v2304_v57 }
  0x97   :  { %1202 = vmatpush1.bf16.msra.mxu0 %v2225_v62 }
  0x98   :  { %1203 = vmatprep.subr.bf16.mxu0 %v2230_v63 }
  0x9a   :  { %412 = vmatmul.mubr.bf16.gmra.mrb[16].mxu0 %v121_v1  ;;  %525 = vmatmul.mubr.bf16.gmra.mrb[16].mxu1 %v121_v1  ;;  %v173_v1 = vsub.s32 3, %v2555_v28 }
  0x9b   :  { %421 = vmatprep.mubr.bf16.mxu0 %v2435_v2  ;;  %1204 = vmatpush1.bf16.msra.mxu0 %v2228_v0  ;;  %v2257_v0 = vld [vmem:[#allocation8 + $0x114] ss:$8 sps:$4 sm:$0xff]  }
  0x9c   :  { %1205 = vmatprep.subr.bf16.mxu0 %v2233_v3  ;;  %534 = vmatprep.mubr.bf16.mxu1 %v2435_v2 }
  0x9f   :  { %1206 = vmatpush1.bf16.msra.mxu0 %v2231_v6  ;;  %v2591_v6 = vrot.slane %v2561_v29, %v169_v51 }
  0xa0   :  { %1207 = vmatprep.subr.bf16.mxu0 %v2236_v7  ;;  %v2305_v7 = vld [vmem:[#allocation9 + $0x10] sm:$0xff]  }
  0xa1   :  { %1990 = vmatpush3.bf16.msra.mxu1 %v2305_v7 }
  0xa2   :  { %422 = vmatmul.mubr.bf16.gmra.mrb[20].mxu0 %v122_v8  ;;  %535 = vmatmul.mubr.bf16.gmra.mrb[20].mxu1 %v122_v8 }
  0xa3   :  { %431 = vmatprep.mubr.bf16.mxu0 %v2435_v2  ;;  %1208 = vmatpush1.bf16.msra.mxu0 %v2234_v9 }
  0xa4   :  { %1209 = vmatprep.subr.bf16.mxu0 %v2239_v10  ;;  %544 = vmatprep.mubr.bf16.mxu1 %v2435_v2  ;;  %v2306_v10 = vld [vmem:[#allocation9 + $0x58] sm:$0xff]  }
  0xa5   :  { %1991 = vmatprep.subr.bf16.mxu1 %v2306_v10 }
  0xa7   :  { %1210 = vmatpush1.bf16.msra.mxu0 %v2237_v13 }
  0xa8   :  { %1211 = vmatprep.subr.bf16.mxu0 %v2242_v14  ;;  %v2260_v14 = vld [vmem:[#allocation8 + $0x124] ss:$8 sps:$4 sm:$0xff]  }
  0xaa   :  { %432 = vmatmul.mubr.bf16.gmra.mrb[24].mxu0 %v123_v15  ;;  %545 = vmatmul.mubr.bf16.gmra.mrb[24].mxu1 %v123_v15 }
  0xab   :  { %441 = vmatprep.mubr.bf16.mxu0 %v2435_v2  ;;  %1212 = vmatpush1.bf16.msra.mxu0 %v2240_v16  ;;  %v2598_v16 = vrot.slane %v2561_v29, %v173_v1 }
  0xac   :  { %554 = vmatprep.mubr.bf16.mxu1 %v2435_v2  ;;  %1213 = vmatprep.subr.bf16.mxu0 %v2245_v20  ;;  %v161_v2 = vsub.s32 0, %v2555_v28 }
  0xae   :  { %v2567_v31 = vrot.slane %v2561_v29, %v161_v2 }
  0xaf   :  { %1214 = vmatpush1.bf16.msra.mxu0 %v2243_v21  ;;  %v2307_v21 = vld [vmem:[#allocation9 + $0x18] sm:$0xff]  }
  0xb0   :  { %1215 = vmatprep.subr.bf16.mxu0 %v2248_v22  ;;  %1992 = vmatpush3.bf16.msra.mxu1 %v2307_v21 }
  0xb1   :  { %1993 = vmatprep.subr.bf16.mxu1 %v2308_v27 }
  0xb2   :  { %442 = vmatmul.mubr.bf16.gmra.mrb[28].mxu0 %v124_v19  ;;  %555 = vmatmul.mubr.bf16.gmra.mrb[28].mxu1 %v124_v19 }
  0xb3   :  { %1216 = vmatpush1.bf16.msra.mxu0 %v2246_v23 }
  0xb4   :  { %1217 = vmatprep.subr.bf16.mxu0 %v2251_v24 }
  0xb7   :  { %1218 = vmatpush1.bf16.msra.mxu0 %v2249_v25 }
  0xb8   :  { %1300 = vmatprep.subr.bf16.mxu0 %v2254_v26 }
 0x14d   :  { %v373_v33 = vpop.f32.mrb[0].mxu0  ;;  %v486_v15 = vpop.f32.mrb[0].mxu1 }
 0x14e   :  { %v374_v35 = vadd.f32 %v373_v33, %v2567_v31  ;;  %v375_v36 = vpop.f32.mrb[1].mxu0  ;;  %v487_v19 = vadd.f32 %v486_v15, %v2591_v6  ;;  %v488_v20 = vpop.f32.mrb[1].mxu1 }
 0x14f   :  { %v376_v37 = vadd.f32 %v375_v36, %v2572_v32  ;;  %v377_v38 = vpop.f32.mrb[2].mxu0  ;;  %v490_v26 = vpop.f32.mrb[2].mxu1  ;;  %v2258_v36 = vld [vmem:[#allocation8 + $0x120] ss:$8 sps:$4 sm:$0xff]  }
 0x150   :  { %v631_v39 = vmul.f32 %v2574_v34, %v374_v35  ;;  %v378_v40 = vadd.f32 %v377_v38, %v2567_v31  ;;  %v379_v41 = vpop.f32.mrb[3].mxu0  ;;  %vm565_vm0 = vcmp.gt.f32.partialorder %v374_v35, 0.0  ;;  %v492_v38 = vpop.f32.mrb[3].mxu1  ;;  %vm567_vm8 = vcmp.gt.f32.partialorder %v487_v19, 0.0 }
 0x151   :  { %v632_v42 = vmul.f32 %v2574_v34, %v376_v37  ;;  %v380_v43 = vadd.f32 %v379_v41, %v2572_v32  ;;  %vm566_vm1 = vcmp.gt.f32.partialorder %v376_v37, 0.0  ;;  %v2263_v41 = vld [vmem:[#allocation8 + $0x134] ss:$8 sps:$4 sm:$0xff]   ;;  %v493_v7 = vadd.f32 %v492_v38, %v2598_v16 }
 0x152   :  { %vm569_vm2 = vcmp.gt.f32.partialorder %v378_v40, 0.0  ;;  %v635_v47 = vmul.f32 %v2574_v34, %v378_v40  ;;  %v695_v49 = vsel %vm565_vm0, %v374_v35, %v631_v39 }
 0x153   :  { %vm570_vm3 = vcmp.gt.f32.partialorder %v380_v43, 0.0  ;;  %v636_v48 = vmul.f32 %v2574_v34, %v380_v43  ;;  %v696_v55 = vsel %vm566_vm1, %v376_v37, %v632_v42  ;;  %v633_v37 = vmul.f32 %v2574_v34, %v487_v19 }
 0x154   :  { %v699_v50 = vsel %vm569_vm2, %v378_v40, %v635_v47  ;;  %v489_v42 = vadd.f32 %v488_v20, %v2598_v16  ;;  %v2309_v47 = vld [vmem:[#allocation9 + $0x20] sm:$0xff]   ;;  %v638_v27 = vmul.f32 %v2574_v34, %v493_v7  ;;  %vm572_vm2 = vcmp.gt.f32.partialorder %v493_v7, 0.0 }
 0x155   :  { %v759_v53 = vpack.c.bf16 %v699_v50, %v695_v49  ;;  %v383_v54 = vpop.f32.mrb[4].mxu0  ;;  %v700_v56 = vsel %vm570_vm3, %v380_v43, %v636_v48  ;;  %v491_v43 = vadd.f32 %v490_v26, %v2591_v6  ;;  %v2310_v50 = vld [vmem:[#allocation9 + $0x68] sm:$0xff]   ;;  %1994 = vmatpush3.bf16.msra.mxu1 %v2309_v47 }
 0x156   :  { %v384_v58 = vadd.f32 %v383_v54, %v2567_v31  ;;  %v385_v59 = vpop.f32.mrb[5].mxu0  ;;  %v760_v60 = vpack.c.bf16 %v700_v56, %v696_v55  ;;  %v2266_v56 = vld [vmem:[#allocation8 + $0x144] ss:$8 sps:$4 sm:$0xff]   ;;  %vm568_vm14 = vcmp.gt.f32.partialorder %v489_v42, 0.0  ;;  %v634_v57 = vmul.f32 %v2574_v34, %v489_v42  ;;  %1995 = vmatprep.subr.bf16.mxu1 %v2310_v50 }
 0x157   :  { %v386_v62 = vadd.f32 %v385_v59, %v2572_v32  ;;  %v387_v63 = vpop.f32.mrb[6].mxu0  ;;  %vm571_vm11 = vcmp.gt.f32.partialorder %v491_v43, 0.0  ;;  %v637_v54 = vmul.f32 %v2574_v34, %v491_v43 }
 0x158   :  { %v639_v3 = vmul.f32 %v2574_v34, %v384_v58  ;;  %v388_v4 = vadd.f32 %v387_v63, %v2567_v31  ;;  %v389_v5 = vpop.f32.mrb[7].mxu0  ;;  %1219 = vmatprep.mubr.bf16.mxu0 %v760_v60  ;;  %vm573_vm4 = vcmp.gt.f32.partialorder %v384_v58, 0.0 }
 0x159   :  { %v640_v8 = vmul.f32 %v2574_v34, %v386_v62  ;;  %v390_v9 = vadd.f32 %v389_v5, %v2572_v32  ;;  %1220 = vmatmul.mubr.bf16.vlgmr.msra.gmra.mrb[32].mxu0 %v759_v53  ;;  %vm574_vm5 = vcmp.gt.f32.partialorder %v386_v62, 0.0  ;;  %v2614_v53 = vsel %vm567_vm8, %v487_v19, %v633_v37 }
 0x15a   :  { %vm577_vm6 = vcmp.gt.f32.partialorder %v388_v4, 0.0  ;;  %v643_v11 = vmul.f32 %v2574_v34, %v388_v4  ;;  %1301 = vmatpush1.bf16.msra.mxu0 %v2252_v61  ;;  %v703_v17 = vsel %vm573_vm4, %v384_v58, %v639_v3  ;;  %v496_v58 = vpop.f32.mrb[4].mxu1 }
 0x15b   :  { %vm578_vm7 = vcmp.gt.f32.partialorder %v390_v9, 0.0  ;;  %v644_v13 = vmul.f32 %v2574_v34, %v390_v9  ;;  %1302 = vmatprep.subr.bf16.mxu0 %v2257_v0  ;;  %v704_v23 = vsel %vm574_vm5, %v386_v62, %v640_v8  ;;  %v2622_v62 = vsel %vm571_vm11, %v491_v43, %v637_v54  ;;  %v498_v63 = vpop.f32.mrb[5].mxu1  ;;  %v2311_v0 = vld [vmem:[#allocation9 + $0x28] sm:$0xff]  }
 0x15c   :  { %v707_v18 = vsel %vm577_vm6, %v388_v4, %v643_v11  ;;  %v761_v5 = vpack.c.bf16 %v2622_v62, %v2614_v53  ;;  %v500_v8 = vpop.f32.mrb[6].mxu1  ;;  %v2630_v19 = vadd.f32 %v496_v58, %v2591_v6  ;;  %1996 = vmatpush3.bf16.msra.mxu1 %v2311_v0  ;;  %v499_v37 = vadd.f32 %v498_v63, %v2598_v16 }
 0x15d   :  { %v393_v22 = vpop.f32.mrb[8].mxu0  ;;  %v708_v24 = vsel %vm578_vm7, %v390_v9, %v644_v13  ;;  %v763_v25 = vpack.c.bf16 %v707_v18, %v703_v17  ;;  %v2312_v9 = vld [vmem:[#allocation9 + $0x70] sm:$0xff]   ;;  %v2264_v13 = vld [vmem:[#allocation8 + $0x140] ss:$8 sps:$4 sm:$0xff]   ;;  %v2644_v38 = vadd.f32 %v500_v8, %v2591_v6 }
 0x15e   :  { %v394_v33 = vadd.f32 %v393_v22, %v2567_v31  ;;  %v395_v29 = vpop.f32.mrb[9].mxu0  ;;  %1303 = vmatpush1.bf16.msra.mxu0 %v2255_v12  ;;  %v764_v35 = vpack.c.bf16 %v708_v24, %v704_v23  ;;  %v2269_v18 = vld [vmem:[#allocation8 + $0x154] ss:$8 sps:$4 sm:$0xff]   ;;  %v2635_v23 = vsel %vm568_vm14, %v489_v42, %v634_v57  ;;  %1997 = vmatprep.subr.bf16.mxu1 %v2312_v9  ;;  %vm575_vm4 = vcmp.gt.f32.partialorder %v2630_v19, 0.0 }
 0x15f   :  { %v396_v39 = vadd.f32 %v395_v29, %v2572_v32  ;;  %v397_v40 = vpop.f32.mrb[10].mxu0  ;;  %1304 = vmatprep.subr.bf16.mxu0 %v2260_v14  ;;  %v502_v14 = vpop.f32.mrb[7].mxu1  ;;  %v2313_v24 = vld [vmem:[#allocation9 + $0x30] sm:$0xff]   ;;  %v2649_v42 = vmul.f32 %v2574_v34, %v2630_v19  ;;  %vm576_vm5 = vcmp.gt.f32.partialorder %v499_v37, 0.0  ;;  %v642_v63 = vmul.f32 %v2574_v34, %v499_v37 }
 0x160   :  { %vm581_vm9 = vcmp.gt.f32.partialorder %v394_v33, 0.0  ;;  %v647_v44 = vmul.f32 %v2574_v34, %v394_v33  ;;  %v398_v45 = vadd.f32 %v397_v40, %v2567_v31  ;;  %v399_v46 = vpop.f32.mrb[11].mxu0  ;;  %1229 = vmatprep.mubr.bf16.mxu0 %v764_v35  ;;  %v2267_v29 = vld [vmem:[#allocation8 + $0x150] ss:$8 sps:$4 sm:$0xff]   ;;  %v503_v43 = vadd.f32 %v502_v14, %v2598_v16  ;;  %1998 = vmatpush3.bf16.msra.mxu1 %v2313_v24 }
 0x161   :  { %vm582_vm10 = vcmp.gt.f32.partialorder %v396_v39, 0.0  ;;  %v648_v48 = vmul.f32 %v2574_v34, %v396_v39  ;;  %v400_v49 = vadd.f32 %v399_v46, %v2572_v32  ;;  %1230 = vmatmul.mubr.bf16.gmra.mrb[36].mxu0 %v763_v25  ;;  %v2667_v0 = vmul.f32 %v2574_v34, %v2644_v38 }
 0x162   :  { %vm585_vm12 = vcmp.gt.f32.partialorder %v398_v45, 0.0  ;;  %v651_v51 = vmul.f32 %v2574_v34, %v398_v45  ;;  %1305 = vmatpush1.bf16.msra.mxu0 %v2258_v36  ;;  %v711_v60 = vsel %vm581_vm9, %v394_v33, %v647_v44  ;;  %v2272_v36 = vld [vmem:[#allocation8 + $0x164] ss:$8 sps:$4 sm:$0xff]   ;;  %vm579_vm7 = vcmp.gt.f32.partialorder %v2644_v38, 0.0 }
 0x163   :  { %vm586_vm13 = vcmp.gt.f32.partialorder %v400_v49, 0.0  ;;  %v652_v55 = vmul.f32 %v2574_v34, %v400_v49  ;;  %1306 = vmatprep.subr.bf16.mxu0 %v2263_v41  ;;  %v712_v59 = vsel %vm582_vm10, %v396_v39, %v648_v48  ;;  %v506_v39 = vpop.f32.mrb[8].mxu1  ;;  %vm580_vm8 = vcmp.gt.f32.partialorder %v503_v43, 0.0 }
 0x164   :  { %v715_v61 = vsel %vm585_vm12, %v398_v45, %v651_v51  ;;  %v508_v44 = vpop.f32.mrb[9].mxu1  ;;  %v2661_v57 = vadd.f32 %v506_v39, %v2591_v6  ;;  %v2690_v24 = vsel %vm576_vm5, %v499_v37, %v642_v63  ;;  %v2276_v37 = vld [vmem:[#allocation8 + $0x180] ss:$8 sps:$4 sm:$0xff]  }
 0x165   :  { %v403_v1 = vpop.f32.mrb[12].mxu0  ;;  %v716_v3 = vsel %vm586_vm13, %v400_v49, %v652_v55  ;;  %v767_v4 = vpack.c.bf16 %v715_v61, %v711_v60  ;;  %v2654_v49 = vsel %vm572_vm2, %v493_v7, %v638_v27  ;;  %v510_v50 = vpop.f32.mrb[10].mxu1  ;;  %v2270_v55 = vld [vmem:[#allocation8 + $0x160] ss:$8 sps:$4 sm:$0xff]   ;;  %v2275_v61 = vld [vmem:[#allocation8 + $0x174] ss:$8 sps:$4 sm:$0xff]   ;;  %v646_v7 = vmul.f32 %v2574_v34, %v503_v43 }
 0x166   :  { %v404_v10 = vadd.f32 %v403_v1, %v2567_v31  ;;  %v405_v11 = vpop.f32.mrb[13].mxu0  ;;  %1307 = vmatpush1.bf16.msra.mxu0 %v2261_v52  ;;  %v768_v12 = vpack.c.bf16 %v716_v3, %v712_v59  ;;  %v512_v58 = vpop.f32.mrb[11].mxu1 }
 0x167   :  { %v406_v15 = vadd.f32 %v405_v11, %v2572_v32  ;;  %v407_v17 = vpop.f32.mrb[14].mxu0  ;;  %1308 = vmatprep.subr.bf16.mxu0 %v2266_v56  ;;  %v762_v56 = vpack.c.bf16 %v2654_v49, %v2635_v23 }
 0x168   :  { %v655_v20 = vmul.f32 %v2574_v34, %v404_v10  ;;  %v408_v21 = vadd.f32 %v407_v17, %v2567_v31  ;;  %v409_v22 = vpop.f32.mrb[15].mxu0  ;;  %1239 = vmatprep.mubr.bf16.mxu0 %v768_v12  ;;  %vm589_vm15 = vcmp.gt.f32.partialorder %v404_v10, 0.0  ;;  %v2273_v12 = vld [vmem:[#allocation8 + $0x170] ss:$8 sps:$4 sm:$0xff]   ;;  %v2278_v17 = vld [vmem:[#allocation8 + $0x184] ss:$8 sps:$4 sm:$0xff]  }
 0x169   :  { %v656_v25 = vmul.f32 %v2574_v34, %v406_v15  ;;  %v410_v26 = vadd.f32 %v409_v22, %v2572_v32  ;;  %1240 = vmatmul.mubr.bf16.gmra.mrb[40].mxu0 %v767_v4  ;;  %vm590_vm0 = vcmp.gt.f32.partialorder %v406_v15, 0.0  ;;  %v513_v22 = vadd.f32 %v512_v58, %v2598_v16 }
 0x16a   :  { %vm593_vm1 = vcmp.gt.f32.partialorder %v408_v21, 0.0  ;;  %v659_v33 = vmul.f32 %v2574_v34, %v408_v21  ;;  %1309 = vmatpush1.bf16.msra.mxu0 %v2264_v13  ;;  %v719_v40 = vsel %vm589_vm15, %v404_v10, %v655_v20  ;;  %v2676_v10 = vadd.f32 %v508_v44, %v2598_v16  ;;  %v516_v20 = vpop.f32.mrb[12].mxu1 }
 0x16b   :  { %vm594_vm3 = vcmp.gt.f32.partialorder %v410_v26, 0.0  ;;  %v660_v35 = vmul.f32 %v2574_v34, %v410_v26  ;;  %1310 = vmatprep.subr.bf16.mxu0 %v2269_v18  ;;  %v720_v46 = vsel %vm590_vm0, %v406_v15, %v656_v25  ;;  %v2681_v13 = vmul.f32 %v2574_v34, %v2661_v57 }
 0x16c   :  { %v723_v41 = vsel %vm593_vm1, %v408_v21, %v659_v33  ;;  %v2686_v18 = vadd.f32 %v510_v50, %v2591_v6  ;;  %v2693_v25 = vsel %vm580_vm8, %v503_v43, %v646_v7  ;;  %vm584_vm12 = vcmp.gt.f32.partialorder %v2676_v10, 0.0 }
 0x16d   :  { %v413_v45 = vpop.f32.mrb[16].mxu0  ;;  %v724_v47 = vsel %vm594_vm3, %v410_v26, %v660_v35  ;;  %v771_v48 = vpack.c.bf16 %v723_v41, %v719_v40  ;;  %v518_v26 = vpop.f32.mrb[13].mxu1  ;;  %v2701_v43 = vadd.f32 %v516_v20, %v2591_v6  ;;  %v650_v50 = vmul.f32 %v2574_v34, %v2676_v10 }
 0x16e   :  { %v414_v51 = vadd.f32 %v413_v45, %v2567_v31  ;;  %v415_v52 = vpop.f32.mrb[17].mxu0  ;;  %1311 = vmatpush1.bf16.msra.mxu0 %v2267_v29  ;;  %v772_v54 = vpack.c.bf16 %v724_v47, %v720_v46  ;;  %v520_v39 = vpop.f32.mrb[14].mxu1  ;;  %vm588_vm13 = vcmp.gt.f32.partialorder %v513_v22, 0.0  ;;  %v654_v58 = vmul.f32 %v2574_v34, %v513_v22 }
 0x16f   :  { %v416_v59 = vadd.f32 %v415_v52, %v2572_v32  ;;  %v417_v60 = vpop.f32.mrb[18].mxu0  ;;  %1312 = vmatprep.subr.bf16.mxu0 %v2272_v36  ;;  %v766_v36 = vpack.c.bf16 %v2693_v25, %v2690_v24  ;;  %v522_v45 = vpop.f32.mrb[15].mxu1  ;;  %vm583_vm0 = vcmp.gt.f32.partialorder %v2661_v57, 0.0  ;;  %vm587_vm2 = vcmp.gt.f32.partialorder %v2686_v18, 0.0  ;;  %v2315_v24 = vld [vmem:[#allocation9 + $0x38] sm:$0xff]  }
 0x170   :  { %vm597_vm6 = vcmp.gt.f32.partialorder %v414_v51, 0.0  ;;  %v663_v1 = vmul.f32 %v2574_v34, %v414_v51  ;;  %v418_v3 = vadd.f32 %v417_v60, %v2567_v31  ;;  %v419_v4 = vpop.f32.mrb[19].mxu0  ;;  %1249 = vmatprep.mubr.bf16.mxu0 %v772_v54  ;;  %v855_v25 = vld [vmem:[%s3067_s5] sm:$0x3]  ;;  %s1983_s5 = sld [smem:[#allocation2 + $0x2]] }
 0x171   :  { %v664_v8 = vmul.f32 %v2574_v34, %v416_v59  ;;  %v420_v9 = vadd.f32 %v419_v4, %v2572_v32  ;;  %1250 = vmatmul.mubr.bf16.gmra.mrb[44].mxu0 %v771_v48  ;;  %vm598_vm9 = vcmp.gt.f32.partialorder %v416_v59, 0.0  ;;  %v2281_v48 = vld [vmem:[#allocation8 + $0x194] ss:$8 sps:$4 sm:$0xff]   ;;  %v2729_v4 = vadd.f32 %v518_v26, %v2598_v16 }
 0x172   :  { %vm601_vm10 = vcmp.gt.f32.partialorder %v418_v3, 0.0  ;;  %v667_v11 = vmul.f32 %v2574_v34, %v418_v3  ;;  %1313 = vmatpush1.bf16.msra.mxu0 %v2270_v55  ;;  %v727_v15 = vsel %vm597_vm6, %v414_v51, %v663_v1  ;;  %v2708_v51 = vmul.f32 %v2574_v34, %v2686_v18  ;;  %v2279_v1 = vld [vmem:[#allocation8 + $0x190] ss:$8 sps:$4 sm:$0xff]  }
 0x173   :  { %vm602_vm11 = vcmp.gt.f32.partialorder %v420_v9, 0.0  ;;  %v668_v14 = vmul.f32 %v2574_v34, %v420_v9  ;;  %1314 = vmatprep.subr.bf16.mxu0 %v2275_v61  ;;  %v728_v33 = vsel %vm598_vm9, %v416_v59, %v664_v8  ;;  %v2720_v61 = vsel %vm575_vm4, %v2630_v19, %v2649_v42  ;;  %v2284_v42 = vld [vmem:[#allocation8 + $0x1a4] ss:$8 sps:$4 sm:$0xff]  }
 0x174   :  { %v731_v21 = vsel %vm601_vm10, %v418_v3, %v667_v11  ;;  %v2726_v3 = vmul.f32 %v2574_v34, %v2701_v43  ;;  %v2737_v8 = vsel %vm579_vm7, %v2644_v38, %v2667_v0  ;;  %v2751_v38 = vsel %vm588_vm13, %v513_v22, %v654_v58 }
 0x175   :  { %v423_v27 = vpop.f32.mrb[20].mxu0  ;;  %v732_v29 = vsel %vm602_vm11, %v420_v9, %v668_v14  ;;  %v775_v35 = vpack.c.bf16 %v731_v21, %v727_v15  ;;  %v526_v9 = vpop.f32.mrb[16].mxu1  ;;  %v765_v14 = vpack.c.bf16 %v2737_v8, %v2720_v61  ;;  %v2743_v15 = vadd.f32 %v520_v39, %v2591_v6  ;;  %v2282_v39 = vld [vmem:[#allocation8 + $0x1a0] ss:$8 sps:$4 sm:$0xff]  }
 0x176   :  { %v424_v40 = vadd.f32 %v423_v27, %v2567_v31  ;;  %v425_v41 = vpop.f32.mrb[21].mxu0  ;;  %1315 = vmatpush1.bf16.msra.mxu0 %v2273_v12  ;;  %v776_v44 = vpack.c.bf16 %v732_v29, %v728_v33  ;;  %v2748_v27 = vsel %vm584_vm12, %v2676_v10, %v650_v50  ;;  %vm592_vm4 = vcmp.gt.f32.partialorder %v2729_v4, 0.0 }
 0x177   :  { %v426_v46 = vadd.f32 %v425_v41, %v2572_v32  ;;  %v427_v47 = vpop.f32.mrb[22].mxu0  ;;  %1316 = vmatprep.subr.bf16.mxu0 %v2278_v17  ;;  %v528_v17 = vpop.f32.mrb[17].mxu1  ;;  %v658_v22 = vmul.f32 %v2574_v34, %v2729_v4  ;;  %vm591_vm7 = vcmp.gt.f32.partialorder %v2701_v43, 0.0  ;;  %vm595_vm9 = vcmp.gt.f32.partialorder %v2743_v15, 0.0 }
 0x178   :  { %vm605_vm14 = vcmp.gt.f32.partialorder %v424_v40, 0.0  ;;  %v671_v52 = vmul.f32 %v2574_v34, %v424_v40  ;;  %v428_v54 = vadd.f32 %v427_v47, %v2567_v31  ;;  %v429_v55 = vpop.f32.mrb[23].mxu0  ;;  %1259 = vmatprep.mubr.bf16.mxu0 %v776_v44  ;;  %v530_v0 = vpop.f32.mrb[18].mxu1  ;;  %v770_v47 = vpack.c.bf16 %v2751_v38, %v2748_v27 }
 0x179   :  { %vm606_vm15 = vcmp.gt.f32.partialorder %v426_v46, 0.0  ;;  %v672_v59 = vmul.f32 %v2574_v34, %v426_v46  ;;  %v430_v60 = vadd.f32 %v429_v55, %v2572_v32  ;;  %1260 = vmatmul.mubr.bf16.gmra.mrb[48].mxu0 %v775_v35  ;;  %v532_v41 = vpop.f32.mrb[19].mxu1  ;;  %v2776_v58 = vadd.f32 %v528_v17, %v2598_v16 }
 0x17a   :  { %vm609_vm1 = vcmp.gt.f32.partialorder %v428_v54, 0.0  ;;  %v675_v63 = vmul.f32 %v2574_v34, %v428_v54  ;;  %1317 = vmatpush1.bf16.msra.mxu0 %v2276_v37  ;;  %v735_v19 = vsel %vm605_vm14, %v424_v40, %v671_v52  ;;  %v2756_v40 = vadd.f32 %v522_v45, %v2598_v16  ;;  %v2287_v37 = vld [vmem:[#allocation8 + $0x1b4] ss:$8 sps:$4 sm:$0xff]  }
 0x17b   :  { %vm610_vm3 = vcmp.gt.f32.partialorder %v430_v60, 0.0  ;;  %v676_v7 = vmul.f32 %v2574_v34, %v430_v60  ;;  %1318 = vmatprep.subr.bf16.mxu0 %v2281_v48  ;;  %v736_v11 = vsel %vm606_vm15, %v426_v46, %v672_v59  ;;  %v2763_v46 = vmul.f32 %v2574_v34, %v2743_v15 }
 0x17c   :  { %v739_v12 = vsel %vm609_vm1, %v428_v54, %v675_v63  ;;  %v2770_v52 = vadd.f32 %v526_v9, %v2591_v6  ;;  %vm596_vm10 = vcmp.gt.f32.partialorder %v2756_v40, 0.0  ;;  %v662_v63 = vmul.f32 %v2574_v34, %v2756_v40  ;;  %v536_v9 = vpop.f32.mrb[20].mxu1 }
 0x17d   :  { %v433_v20 = vpop.f32.mrb[24].mxu0  ;;  %v740_v21 = vsel %vm610_vm3, %v430_v60, %v676_v7  ;;  %v779_v26 = vpack.c.bf16 %v739_v12, %v735_v19  ;;  %v2285_v60 = vld [vmem:[#allocation8 + $0x1b0] ss:$8 sps:$4 sm:$0xff]   ;;  %v2792_v17 = vmul.f32 %v2574_v34, %v2776_v58  ;;  %vm600_vm12 = vcmp.gt.f32.partialorder %v2776_v58, 0.0 }
 0x17e   :  { %v434_v33 = vadd.f32 %v433_v20, %v2567_v31  ;;  %v435_v29 = vpop.f32.mrb[25].mxu0  ;;  %1319 = vmatpush1.bf16.msra.mxu0 %v2279_v1  ;;  %v780_v35 = vpack.c.bf16 %v740_v21, %v736_v11  ;;  %v2788_v12 = vmul.f32 %v2574_v34, %v2770_v52  ;;  %v2798_v20 = vsel %vm583_vm0, %v2661_v57, %v2681_v13  ;;  %v538_v21 = vpop.f32.mrb[21].mxu1 }
 0x17f   :  { %v436_v44 = vadd.f32 %v435_v29, %v2572_v32  ;;  %v437_v10 = vpop.f32.mrb[26].mxu0  ;;  %1320 = vmatprep.subr.bf16.mxu0 %v2284_v42  ;;  %v2290_v42 = vld [vmem:[#allocation8 + $0x1c4] ss:$8 sps:$4 sm:$0xff]   ;;  %vm599_vm13 = vcmp.gt.f32.partialorder %v2770_v52, 0.0  ;;  %v2940_v61 = vrot.slane %v855_v25, %v165_v30 }
 0x180   :  { %vm613_vm5 = vcmp.gt.f32.partialorder %v434_v33, 0.0  ;;  %v679_v45 = vmul.f32 %v2574_v34, %v434_v33  ;;  %v438_v48 = vadd.f32 %v437_v10, %v2567_v31  ;;  %v439_v50 = vpop.f32.mrb[27].mxu0  ;;  %1269 = vmatprep.mubr.bf16.mxu0 %v780_v35  ;;  %v2805_v35 = vsel %vm587_vm2, %v2686_v18, %v2708_v51 }
 0x181   :  { %vm614_vm6 = vcmp.gt.f32.partialorder %v436_v44, 0.0  ;;  %v680_v54 = vmul.f32 %v2574_v34, %v436_v44  ;;  %v440_v55 = vadd.f32 %v439_v50, %v2572_v32  ;;  %1270 = vmatmul.mubr.bf16.gmra.mrb[52].mxu0 %v779_v26 }
 0x182   :  { %vm617_vm8 = vcmp.gt.f32.partialorder %v438_v48, 0.0  ;;  %v683_v59 = vmul.f32 %v2574_v34, %v438_v48  ;;  %1321 = vmatpush1.bf16.msra.mxu0 %v2282_v39  ;;  %v743_v19 = vsel %vm613_vm5, %v434_v33, %v679_v45  ;;  %v2808_v39 = vadd.f32 %v530_v0, %v2591_v6  ;;  %v2293_v0 = vld [vmem:[#allocation8 + $0x1d4] ss:$8 sps:$4 sm:$0xff]  }
 0x183   :  { %vm618_vm11 = vcmp.gt.f32.partialorder %v440_v55, 0.0  ;;  %v684_v1 = vmul.f32 %v2574_v34, %v440_v55  ;;  %1322 = vmatprep.subr.bf16.mxu0 %v2287_v37  ;;  %v744_v7 = vsel %vm614_vm6, %v436_v44, %v680_v54  ;;  %v540_v44 = vpop.f32.mrb[22].mxu1  ;;  %v2288_v37 = vld [vmem:[#allocation8 + $0x1c0] ss:$8 sps:$4 sm:$0xff]   ;;  %v769_v45 = vpack.c.bf16 %v2805_v35, %v2798_v20 }
 0x184   :  { %v747_v11 = vsel %vm617_vm8, %v438_v48, %v683_v59  ;;  %v533_v48 = vadd.f32 %v532_v41, %v2598_v16  ;;  %v542_v50 = vpop.f32.mrb[23].mxu1  ;;  %vm603_vm14 = vcmp.gt.f32.partialorder %v2808_v39, 0.0  ;;  %v669_v54 = vmul.f32 %v2574_v34, %v2808_v39 }
 0x185   :  { %v443_v26 = vpop.f32.mrb[28].mxu0  ;;  %v748_v33 = vsel %vm618_vm11, %v440_v55, %v684_v1  ;;  %v783_v29 = vpack.c.bf16 %v747_v11, %v743_v19  ;;  %v2822_v55 = vsel %vm592_vm4, %v2729_v4, %v658_v22  ;;  %v2291_v22 = vld [vmem:[#allocation8 + $0x1d0] ss:$8 sps:$4 sm:$0xff]  }
 0x186   :  { %v444_v10 = vadd.f32 %v443_v26, %v2567_v31  ;;  %v445_v57 = vpop.f32.mrb[29].mxu0  ;;  %1323 = vmatpush1.bf16.msra.mxu0 %v2285_v60  ;;  %v784_v13 = vpack.c.bf16 %v748_v33, %v744_v7  ;;  %vm604_vm0 = vcmp.gt.f32.partialorder %v533_v48, 0.0  ;;  %v670_v19 = vmul.f32 %v2574_v34, %v533_v48 }
 0x187   :  { %v446_v18 = vadd.f32 %v445_v57, %v2572_v32  ;;  %v447_v51 = vpop.f32.mrb[30].mxu0  ;;  %1324 = vmatprep.subr.bf16.mxu0 %v2290_v42 }
 0x188   :  { %vm621_vm15 = vcmp.gt.f32.partialorder %v444_v10, 0.0  ;;  %v687_v59 = vmul.f32 %v2574_v34, %v444_v10  ;;  %v448_v41 = vadd.f32 %v447_v51, %v2567_v31  ;;  %v449_v60 = vpop.f32.mrb[31].mxu0  ;;  %1279 = vmatprep.mubr.bf16.mxu0 %v784_v13  ;;  %v2833_v31 = vsel %vm596_vm10, %v2756_v40, %v662_v63 }
 0x189   :  { %vm622_vm1 = vcmp.gt.f32.partialorder %v446_v18, 0.0  ;;  %v688_v1 = vmul.f32 %v2574_v34, %v446_v18  ;;  %v450_v7 = vadd.f32 %v449_v60, %v2572_v32  ;;  %1280 = vmatmul.mubr.bf16.gmra.mrb[56].mxu0 %v783_v29  ;;  %v2296_v32 = vld [vmem:[#allocation8 + $0x1e4] ss:$8 sps:$4 sm:$0xff]   ;;  %v774_v33 = vpack.c.bf16 %v2833_v31, %v2822_v55  ;;  %v546_v29 = vpop.f32.mrb[24].mxu1 }
 0x18a   :  { %vm625_vm2 = vcmp.gt.f32.partialorder %v448_v41, 0.0  ;;  %v691_v4 = vmul.f32 %v2574_v34, %v448_v41  ;;  %1325 = vmatpush1.bf16.msra.mxu0 %v2288_v37  ;;  %v751_v42 = vsel %vm621_vm15, %v444_v10, %v687_v59  ;;  %v2839_v13 = vadd.f32 %v536_v9, %v2591_v6  ;;  %v548_v63 = vpop.f32.mrb[25].mxu1  ;;  %v2294_v59 = vld [vmem:[#allocation8 + $0x1e0] ss:$8 sps:$4 sm:$0xff]  }
 0x18b   :  { %vm626_vm3 = vcmp.gt.f32.partialorder %v450_v7, 0.0  ;;  %v692_v11 = vmul.f32 %v2574_v34, %v450_v7  ;;  %1326 = vmatprep.subr.bf16.mxu0 %v2293_v0  ;;  %v752_v26 = vsel %vm622_vm1, %v446_v18, %v688_v1  ;;  %v539_v10 = vadd.f32 %v538_v21, %v2598_v16  ;;  %v550_v0 = vpop.f32.mrb[26].mxu1 }
 0x18c   :  { %v755_v57 = vsel %vm625_vm2, %v448_v41, %v691_v4  ;;  %v2846_v40 = vsel %vm591_vm7, %v2701_v43, %v2726_v3  ;;  %v2852_v51 = vsel %vm595_vm9, %v2743_v15, %v2763_v46  ;;  %v541_v9 = vadd.f32 %v540_v44, %v2591_v6  ;;  %v552_v3 = vpop.f32.mrb[27].mxu1  ;;  %v2299_v41 = vld [vmem:[#allocation8 + $0x1f4] ss:$8 sps:$4 sm:$0xff]  }
 0x18d   :  { %v756_v37 = vsel %vm626_vm3, %v450_v7, %v692_v11  ;;  %v787_v18 = vpack.c.bf16 %v755_v57, %v751_v42  ;;  %vm607_vm4 = vcmp.gt.f32.partialorder %v2839_v13, 0.0  ;;  %v673_v43 = vmul.f32 %v2574_v34, %v2839_v13 }
 0x18e   :  { %1327 = vmatpush1.bf16.msra.mxu0 %v2291_v22  ;;  %v788_v21 = vpack.c.bf16 %v756_v37, %v752_v26  ;;  %vm608_vm5 = vcmp.gt.f32.partialorder %v539_v10, 0.0  ;;  %v674_v60 = vmul.f32 %v2574_v34, %v539_v10  ;;  %v773_v15 = vpack.c.bf16 %v2852_v51, %v2846_v40 }
 0x18f   :  { %1328 = vmatprep.subr.bf16.mxu0 %v2296_v32  ;;  %vm611_vm6 = vcmp.gt.f32.partialorder %v541_v9, 0.0  ;;  %v677_v46 = vmul.f32 %v2574_v34, %v541_v9  ;;  %v543_v44 = vadd.f32 %v542_v50, %v2598_v16  ;;  %v2867_v1 = vsel %vm600_vm12, %v2776_v58, %v2792_v17  ;;  %v2297_v17 = vld [vmem:[#allocation8 + $0x1f0] ss:$8 sps:$4 sm:$0xff]  }
 0x190   :  { %1289 = vmatprep.mubr.bf16.mxu0 %v788_v21  ;;  %v2870_v7 = vsel %vm604_vm0, %v533_v48, %v670_v19  ;;  %v547_v4 = vadd.f32 %v546_v29, %v2591_v6  ;;  %v549_v42 = vadd.f32 %v548_v63, %v2598_v16  ;;  %v729_v50 = vsel %vm599_vm13, %v2770_v52, %v2788_v12 }
 0x191   :  { %1290 = vmatmul.mubr.bf16.gmra.mrb[60].mxu0 %v787_v18  ;;  %v778_v22 = vpack.c.bf16 %v2870_v7, %v2867_v1  ;;  %v733_v58 = vsel %vm603_vm14, %v2808_v39, %v669_v54  ;;  %vm612_vm7 = vcmp.gt.f32.partialorder %v543_v44, 0.0  ;;  %v678_v48 = vmul.f32 %v2574_v34, %v543_v44  ;;  %v556_v39 = vpop.f32.mrb[28].mxu1 }
 0x192   :  { %1329 = vmatpush1.bf16.msra.mxu0 %v2294_v59  ;;  %1332 = vmatprep.mubr.bf16.mxu0 %v762_v56  ;;  %vm615_vm8 = vcmp.gt.f32.partialorder %v547_v4, 0.0  ;;  %v681_v19 = vmul.f32 %v2574_v34, %v547_v4  ;;  %vm616_vm9 = vcmp.gt.f32.partialorder %v549_v42, 0.0  ;;  %v682_v52 = vmul.f32 %v2574_v34, %v549_v42  ;;  %v558_v26 = vpop.f32.mrb[29].mxu1 }
 0x193   :  { %1330 = vmatprep.subr.bf16.mxu0 %v2299_v41  ;;  %v777_v12 = vpack.c.bf16 %v733_v58, %v729_v50  ;;  %v551_v11 = vadd.f32 %v550_v0, %v2591_v6  ;;  %v553_v54 = vadd.f32 %v552_v3, %v2598_v16  ;;  %v738_v23 = vsel %vm608_vm5, %v539_v10, %v674_v60  ;;  %v560_v63 = vpop.f32.mrb[30].mxu1 }
 0x194   :  { %v742_v49 = vsel %vm612_vm7, %v543_v44, %v678_v48  ;;  %v557_v56 = vadd.f32 %v556_v39, %v2591_v6  ;;  %v559_v57 = vadd.f32 %v558_v26, %v2598_v16  ;;  %v562_v0 = vpop.f32.mrb[31].mxu1  ;;  %v737_v21 = vsel %vm607_vm4, %v2839_v13, %v673_v43 }
 0x195   :  { %vm619_vm10 = vcmp.gt.f32.partialorder %v551_v11, 0.0  ;;  %v685_v32 = vmul.f32 %v2574_v34, %v551_v11  ;;  %v782_v29 = vpack.c.bf16 %v742_v49, %v738_v23  ;;  %vm620_vm11 = vcmp.gt.f32.partialorder %v553_v54, 0.0 }
 0x196   :  { %1331 = vmatpush1.bf16.msra.mxu0 %v2297_v17  ;;  %v686_v37 = vmul.f32 %v2574_v34, %v553_v54  ;;  %vm623_vm12 = vcmp.gt.f32.partialorder %v557_v56, 0.0  ;;  %v689_v18 = vmul.f32 %v2574_v34, %v557_v56  ;;  %vm624_vm13 = vcmp.gt.f32.partialorder %v559_v57, 0.0 }
 0x197   :  { %v690_v10 = vmul.f32 %v2574_v34, %v559_v57  ;;  %v741_v59 = vsel %vm611_vm6, %v541_v9, %v677_v46  ;;  %v561_v41 = vadd.f32 %v560_v63, %v2591_v6  ;;  %v563_v60 = vadd.f32 %v562_v0, %v2598_v16 }
 0x198   :  { %v781_v3 = vpack.c.bf16 %v741_v59, %v737_v21  ;;  %v746_v44 = vsel %vm616_vm9, %v549_v42, %v682_v52  ;;  %v750_v1 = vsel %vm620_vm11, %v553_v54, %v686_v37  ;;  %v745_v7 = vsel %vm615_vm8, %v547_v4, %v681_v19 }
 0x199   :  { %1333 = vmatmul.mubr.bf16.vlgmr.msra.gmra.mrb[32].mxu0 %v761_v5  ;;  %v749_v50 = vsel %vm619_vm10, %v551_v11, %v685_v32  ;;  %v754_v58 = vsel %vm624_vm13, %v559_v57, %v690_v10  ;;  %vm627_vm14 = vcmp.gt.f32.partialorder %v561_v41, 0.0  ;;  %v693_v6 = vmul.f32 %v2574_v34, %v561_v41 }
 0x19a   :  { %1342 = vmatprep.mubr.bf16.mxu0 %v766_v36  ;;  %vm628_vm15 = vcmp.gt.f32.partialorder %v563_v60, 0.0  ;;  %v694_v16 = vmul.f32 %v2574_v34, %v563_v60  ;;  %v786_v13 = vpack.c.bf16 %v750_v1, %v746_v44  ;;  %v785_v9 = vpack.c.bf16 %v749_v50, %v745_v7  ;;  %v2314_v34 = vld [vmem:[#allocation9 + $0x78] sm:$0xff]  }
 0x19b   :  { %v753_v53 = vsel %vm623_vm12, %v557_v56, %v689_v18  ;;  %v757_v5 = vsel %vm627_vm14, %v561_v41, %v693_v6  ;;  %1999 = vmatprep.subr.bf16.mxu1 %v2314_v34  ;;  %v2936_v36 = vrot.slane %v855_v25, %v161_v2 }
 0x19c   :  { %v758_v62 = vsel %vm628_vm15, %v563_v60, %v694_v16  ;;  %v789_v46 = vpack.c.bf16 %v757_v5, %v753_v53  ;;  %2000 = vmatpush3.bf16.msra.mxu1 %v2315_v24 }
 0x19d   :  { %v790_v43 = vpack.c.bf16 %v758_v62, %v754_v58 }
 0x1a1   :  { %1343 = vmatmul.mubr.bf16.gmra.mrb[36].mxu0 %v765_v14  ;;  %v2942_v14 = vstv %s1965_s3 }
 0x1a2   :  { %1352 = vmatprep.mubr.bf16.mxu0 %v770_v47 }
 0x1a9   :  { %1353 = vmatmul.mubr.bf16.gmra.mrb[40].mxu0 %v769_v45 }
 0x1aa   :  { %1362 = vmatprep.mubr.bf16.mxu0 %v774_v33 }
 0x1b1   :  { %1363 = vmatmul.mubr.bf16.gmra.mrb[44].mxu0 %v773_v15 }
 0x1b2   :  { %1372 = vmatprep.mubr.bf16.mxu0 %v778_v22 }
 0x1b9   :  { %1373 = vmatmul.mubr.bf16.gmra.mrb[48].mxu0 %v777_v12 }
 0x1ba   :  { %1382 = vmatprep.mubr.bf16.mxu0 %v782_v29 }
 0x1c1   :  { %1383 = vmatmul.mubr.bf16.gmra.mrb[52].mxu0 %v781_v3 }
 0x1c2   :  { %1392 = vmatprep.mubr.bf16.mxu0 %v786_v13 }
 0x1c9   :  { %1393 = vmatmul.mubr.bf16.gmra.mrb[56].mxu0 %v785_v9 }
 0x1ca   :  { %1402 = vmatprep.mubr.bf16.mxu0 %v790_v43 }
 0x1d1   :  { %1403 = vmatmul.mubr.bf16.gmra.mrb[60].mxu0 %v789_v46 }
 0x26c   :  { %v1334_v8 = vpop.f32.mrb[32].mxu0 }
 0x26d   :  { %v2078_v27 = vadd.f32 %v1334_v8, %v2936_v36  ;;  %v1336_v38 = vpop.f32.mrb[33].mxu0 }
 0x26e   :  { %v2079_v47 = vadd.f32 %v1336_v38, %v2940_v61  ;;  %v1338_v20 = vpop.f32.mrb[34].mxu0 }
 0x26f   :  { %v1447_v35 = vmul.f32 %v2078_v27, %v2942_v14  ;;  %v2080_v45 = vadd.f32 %v1338_v20, %v2936_v36  ;;  %v1340_v55 = vpop.f32.mrb[35].mxu0  ;;  %vm1413_vm0 = vcmp.gt.f32.partialorder %v2078_v27, 0.0 }
 0x270   :  { %v1448_v2 = vmul.f32 %v2079_v47, %v2942_v14  ;;  %v2081_v28 = vadd.f32 %v1340_v55, %v2940_v61  ;;  %vm1414_vm1 = vcmp.gt.f32.partialorder %v2079_v47, 0.0 }
 0x271   :  { %vm1415_vm2 = vcmp.gt.f32.partialorder %v2080_v45, 0.0  ;;  %v1449_v30 = vmul.f32 %v2080_v45, %v2942_v14  ;;  %v1479_v33 = vsel %vm1413_vm0, %v2078_v27, %v1447_v35 }
 0x272   :  { %vm1416_vm3 = vcmp.gt.f32.partialorder %v2081_v28, 0.0  ;;  %v1450_v31 = vmul.f32 %v2081_v28, %v2942_v14  ;;  %v1480_v4 = vsel %vm1414_vm1, %v2079_v47, %v1448_v2 }
 0x273   :  { %v1481_v40 = vsel %vm1415_vm2, %v2080_v45, %v1449_v30 }
 0x274   :  { %v1511_v51 = vpack.c.bf16 %v1481_v40, %v1479_v33  ;;  %v1344_v15 = vpop.f32.mrb[36].mxu0  ;;  %v1482_v22 = vsel %vm1416_vm3, %v2081_v28, %v1450_v31 }
 0x275   :  { %v2082_v42 = vadd.f32 %v1344_v15, %v2936_v36  ;;  %v1346_v17 = vpop.f32.mrb[37].mxu0  ;;  %v1512_v48 = vpack.c.bf16 %v1482_v22, %v1480_v4 }
 0x276   :  { %v2083_v19 = vadd.f32 %v1346_v17, %v2940_v61  ;;  %v1348_v52 = vpop.f32.mrb[38].mxu0 }
 0x277   :  { %v1451_v12 = vmul.f32 %v2082_v42, %v2942_v14  ;;  %v2084_v11 = vadd.f32 %v1348_v52, %v2936_v36  ;;  %v1350_v39 = vpop.f32.mrb[39].mxu0  ;;  %1694 = vmatprep.mubr.bf16.mxu1 %v1512_v48  ;;  %vm1417_vm4 = vcmp.gt.f32.partialorder %v2082_v42, 0.0 }
 0x278   :  { %v1452_v54 = vmul.f32 %v2083_v19, %v2942_v14  ;;  %v2085_v23 = vadd.f32 %v1350_v39, %v2940_v61  ;;  %1695 = vmatmul.mubr.bf16.vlgmr.msra.gmra.mrb[32].mxu1 %v1511_v51  ;;  %vm1418_vm5 = vcmp.gt.f32.partialorder %v2083_v19, 0.0 }
 0x279   :  { %vm1419_vm6 = vcmp.gt.f32.partialorder %v2084_v11, 0.0  ;;  %v1453_v49 = vmul.f32 %v2084_v11, %v2942_v14  ;;  %v1483_v26 = vsel %vm1417_vm4, %v2082_v42, %v1451_v12 }
 0x27a   :  { %vm1420_vm7 = vcmp.gt.f32.partialorder %v2085_v23, 0.0  ;;  %v1454_v56 = vmul.f32 %v2085_v23, %v2942_v14  ;;  %v1484_v57 = vsel %vm1418_vm5, %v2083_v19, %v1452_v54 }
 0x27b   :  { %v1485_v32 = vsel %vm1419_vm6, %v2084_v11, %v1453_v49 }
 0x27c   :  { %v1354_v29 = vpop.f32.mrb[40].mxu0  ;;  %v1486_v63 = vsel %vm1420_vm7, %v2085_v23, %v1454_v56  ;;  %v1513_v37 = vpack.c.bf16 %v1485_v32, %v1483_v26 }
 0x27d   :  { %v2086_v18 = vadd.f32 %v1354_v29, %v2936_v36  ;;  %v1356_v0 = vpop.f32.mrb[41].mxu0  ;;  %v1514_v10 = vpack.c.bf16 %v1486_v63, %v1484_v57 }
 0x27e   :  { %v2087_v21 = vadd.f32 %v1356_v0, %v2940_v61  ;;  %v1358_v59 = vpop.f32.mrb[42].mxu0 }
 0x27f   :  { %v1455_v3 = vmul.f32 %v2086_v18, %v2942_v14  ;;  %v2088_v41 = vadd.f32 %v1358_v59, %v2936_v36  ;;  %v1360_v60 = vpop.f32.mrb[43].mxu0  ;;  %1702 = vmatprep.mubr.bf16.mxu1 %v1514_v10  ;;  %vm1421_vm8 = vcmp.gt.f32.partialorder %v2086_v18, 0.0 }
 0x280   :  { %v1456_v44 = vmul.f32 %v2087_v21, %v2942_v14  ;;  %v2089_v1 = vadd.f32 %v1360_v60, %v2940_v61  ;;  %1703 = vmatmul.mubr.bf16.gmra.mrb[36].mxu1 %v1513_v37  ;;  %vm1422_vm9 = vcmp.gt.f32.partialorder %v2087_v21, 0.0 }
 0x281   :  { %vm1423_vm10 = vcmp.gt.f32.partialorder %v2088_v41, 0.0  ;;  %v1457_v7 = vmul.f32 %v2088_v41, %v2942_v14  ;;  %v1487_v58 = vsel %vm1421_vm8, %v2086_v18, %v1455_v3 }
 0x282   :  { %vm1424_vm11 = vcmp.gt.f32.partialorder %v2089_v1, 0.0  ;;  %v1458_v50 = vmul.f32 %v2089_v1, %v2942_v14  ;;  %v1488_v13 = vsel %vm1422_vm9, %v2087_v21, %v1456_v44 }
 0x283   :  { %v1489_v6 = vsel %vm1423_vm10, %v2088_v41, %v1457_v7 }
 0x284   :  { %v1364_v16 = vpop.f32.mrb[44].mxu0  ;;  %v1490_v9 = vsel %vm1424_vm11, %v2089_v1, %v1458_v50  ;;  %v1515_v53 = vpack.c.bf16 %v1489_v6, %v1487_v58 }
 0x285   :  { %v2090_v62 = vadd.f32 %v1364_v16, %v2936_v36  ;;  %v1366_v5 = vpop.f32.mrb[45].mxu0  ;;  %v1516_v43 = vpack.c.bf16 %v1490_v9, %v1488_v13 }
 0x286   :  { %v2091_v46 = vadd.f32 %v1366_v5, %v2940_v61  ;;  %v1368_v34 = vpop.f32.mrb[46].mxu0 }
 0x287   :  { %v1459_v24 = vmul.f32 %v2090_v62, %v2942_v14  ;;  %v2092_v25 = vadd.f32 %v1368_v34, %v2936_v36  ;;  %v1370_v8 = vpop.f32.mrb[47].mxu0  ;;  %1710 = vmatprep.mubr.bf16.mxu1 %v1516_v43  ;;  %vm1425_vm12 = vcmp.gt.f32.partialorder %v2090_v62, 0.0 }
 0x288   :  { %v1460_v27 = vmul.f32 %v2091_v46, %v2942_v14  ;;  %v2093_v38 = vadd.f32 %v1370_v8, %v2940_v61  ;;  %1711 = vmatmul.mubr.bf16.gmra.mrb[40].mxu1 %v1515_v53  ;;  %vm1426_vm13 = vcmp.gt.f32.partialorder %v2091_v46, 0.0 }
 0x289   :  { %vm1427_vm14 = vcmp.gt.f32.partialorder %v2092_v25, 0.0  ;;  %v1461_v47 = vmul.f32 %v2092_v25, %v2942_v14  ;;  %v1491_v35 = vsel %vm1425_vm12, %v2090_v62, %v1459_v24 }
 0x28a   :  { %vm1428_vm15 = vcmp.gt.f32.partialorder %v2093_v38, 0.0  ;;  %v1462_v20 = vmul.f32 %v2093_v38, %v2942_v14  ;;  %v1492_v2 = vsel %vm1426_vm13, %v2091_v46, %v1460_v27 }
 0x28b   :  { %v1493_v45 = vsel %vm1427_vm14, %v2092_v25, %v1461_v47 }
 0x28c   :  { %v1374_v55 = vpop.f32.mrb[48].mxu0  ;;  %v1494_v28 = vsel %vm1428_vm15, %v2093_v38, %v1462_v20  ;;  %v1517_v30 = vpack.c.bf16 %v1493_v45, %v1491_v35 }
 0x28d   :  { %v2094_v31 = vadd.f32 %v1374_v55, %v2936_v36  ;;  %v1376_v33 = vpop.f32.mrb[49].mxu0  ;;  %v1518_v40 = vpack.c.bf16 %v1494_v28, %v1492_v2 }
 0x28e   :  { %v2095_v51 = vadd.f32 %v1376_v33, %v2940_v61  ;;  %v1378_v15 = vpop.f32.mrb[50].mxu0 }
 0x28f   :  { %v1463_v4 = vmul.f32 %v2094_v31, %v2942_v14  ;;  %v2096_v22 = vadd.f32 %v1378_v15, %v2936_v36  ;;  %v1380_v42 = vpop.f32.mrb[51].mxu0  ;;  %1718 = vmatprep.mubr.bf16.mxu1 %v1518_v40  ;;  %vm1429_vm0 = vcmp.gt.f32.partialorder %v2094_v31, 0.0 }
 0x290   :  { %v1464_v17 = vmul.f32 %v2095_v51, %v2942_v14  ;;  %v2097_v48 = vadd.f32 %v1380_v42, %v2940_v61  ;;  %1719 = vmatmul.mubr.bf16.gmra.mrb[44].mxu1 %v1517_v30  ;;  %vm1430_vm1 = vcmp.gt.f32.partialorder %v2095_v51, 0.0 }
 0x291   :  { %vm1431_vm2 = vcmp.gt.f32.partialorder %v2096_v22, 0.0  ;;  %v1465_v19 = vmul.f32 %v2096_v22, %v2942_v14  ;;  %v1495_v12 = vsel %vm1429_vm0, %v2094_v31, %v1463_v4  ;;  %vm2437_vm0 = vmmov 0  }
 0x292   :  { %vm1432_vm3 = vcmp.gt.f32.partialorder %v2097_v48, 0.0  ;;  %v1466_v52 = vmul.f32 %v2097_v48, %v2942_v14  ;;  %v1496_v54 = vsel %vm1430_vm1, %v2095_v51, %v1464_v17 }
 0x293   :  { %v1497_v11 = vsel %vm1431_vm2, %v2096_v22, %v1465_v19  ;;  %v2436_v19 = vmov 0.0  }
 0x294   :  { %v1384_v39 = vpop.f32.mrb[52].mxu0  ;;  %v1498_v23 = vsel %vm1432_vm3, %v2097_v48, %v1466_v52  ;;  %v1519_v49 = vpack.c.bf16 %v1497_v11, %v1495_v12  ;;  %2058 = vmatprep.subr.bf16.mxu1 %v2436_v19 }
 0x295   :  { %v2098_v56 = vadd.f32 %v1384_v39, %v2936_v36  ;;  %v1386_v26 = vpop.f32.mrb[53].mxu0  ;;  %v1520_v32 = vpack.c.bf16 %v1498_v23, %v1496_v54  ;;  %v3015_v39 = vstv %s1983_s5 }
 0x296   :  { %v2099_v29 = vadd.f32 %v1386_v26, %v2940_v61  ;;  %v1388_v57 = vpop.f32.mrb[54].mxu0 }
 0x297   :  { %v1467_v63 = vmul.f32 %v2098_v56, %v2942_v14  ;;  %v2100_v37 = vadd.f32 %v1388_v57, %v2936_v36  ;;  %v1390_v18 = vpop.f32.mrb[55].mxu0  ;;  %1726 = vmatprep.mubr.bf16.mxu1 %v1520_v32  ;;  %vm1433_vm4 = vcmp.gt.f32.partialorder %v2098_v56, 0.0 }
 0x298   :  { %v1468_v0 = vmul.f32 %v2099_v29, %v2942_v14  ;;  %v2101_v10 = vadd.f32 %v1390_v18, %v2940_v61  ;;  %1727 = vmatmul.mubr.bf16.gmra.mrb[48].mxu1 %v1519_v49  ;;  %vm1434_vm5 = vcmp.gt.f32.partialorder %v2099_v29, 0.0 }
 0x299   :  { %vm1435_vm6 = vcmp.gt.f32.partialorder %v2100_v37, 0.0  ;;  %v1469_v21 = vmul.f32 %v2100_v37, %v2942_v14  ;;  %v1499_v3 = vsel %vm1433_vm4, %v2098_v56, %v1467_v63 }
 0x29a   :  { %vm1436_vm7 = vcmp.gt.f32.partialorder %v2101_v10, 0.0  ;;  %v1470_v59 = vmul.f32 %v2101_v10, %v2942_v14  ;;  %v1500_v44 = vsel %vm1434_vm5, %v2099_v29, %v1468_v0 }
 0x29b   :  { %v1501_v41 = vsel %vm1435_vm6, %v2100_v37, %v1469_v21 }
 0x29c   :  { %v1394_v60 = vpop.f32.mrb[56].mxu0  ;;  %v1502_v1 = vsel %vm1436_vm7, %v2101_v10, %v1470_v59  ;;  %v1521_v7 = vpack.c.bf16 %v1501_v41, %v1499_v3 }
 0x29d   :  { %v2102_v50 = vadd.f32 %v1394_v60, %v2936_v36  ;;  %v1396_v58 = vpop.f32.mrb[57].mxu0  ;;  %v1522_v6 = vpack.c.bf16 %v1502_v1, %v1500_v44 }
 0x29e   :  { %v2103_v16 = vadd.f32 %v1396_v58, %v2940_v61  ;;  %v1398_v13 = vpop.f32.mrb[58].mxu0 }
 0x29f   :  { %v1471_v9 = vmul.f32 %v2102_v50, %v2942_v14  ;;  %v2104_v53 = vadd.f32 %v1398_v13, %v2936_v36  ;;  %v1400_v62 = vpop.f32.mrb[59].mxu0  ;;  %1734 = vmatprep.mubr.bf16.mxu1 %v1522_v6  ;;  %vm1437_vm8 = vcmp.gt.f32.partialorder %v2102_v50, 0.0 }
 0x2a0   :  { %v1472_v5 = vmul.f32 %v2103_v16, %v2942_v14  ;;  %v2105_v43 = vadd.f32 %v1400_v62, %v2940_v61  ;;  %1735 = vmatmul.mubr.bf16.gmra.mrb[52].mxu1 %v1521_v7  ;;  %vm1438_vm9 = vcmp.gt.f32.partialorder %v2103_v16, 0.0 }
 0x2a1   :  { %vm1439_vm10 = vcmp.gt.f32.partialorder %v2104_v53, 0.0  ;;  %v1473_v46 = vmul.f32 %v2104_v53, %v2942_v14  ;;  %v1503_v24 = vsel %vm1437_vm8, %v2102_v50, %v1471_v9 }
 0x2a2   :  { %vm1440_vm11 = vcmp.gt.f32.partialorder %v2105_v43, 0.0  ;;  %v1474_v34 = vmul.f32 %v2105_v43, %v2942_v14  ;;  %v1504_v27 = vsel %vm1438_vm9, %v2103_v16, %v1472_v5 }
 0x2a3   :  { %v1505_v25 = vsel %vm1439_vm10, %v2104_v53, %v1473_v46 }
 0x2a4   :  { %v1404_v8 = vpop.f32.mrb[60].mxu0  ;;  %v1506_v38 = vsel %vm1440_vm11, %v2105_v43, %v1474_v34  ;;  %v1523_v47 = vpack.c.bf16 %v1505_v25, %v1503_v24 }
 0x2a5   :  { %v2106_v20 = vadd.f32 %v1404_v8, %v2936_v36  ;;  %v1406_v35 = vpop.f32.mrb[61].mxu0  ;;  %v1524_v45 = vpack.c.bf16 %v1506_v38, %v1504_v27 }
 0x2a6   :  { %v2107_v55 = vadd.f32 %v1406_v35, %v2940_v61  ;;  %v1408_v2 = vpop.f32.mrb[62].mxu0 }
 0x2a7   :  { %v1475_v28 = vmul.f32 %v2106_v20, %v2942_v14  ;;  %v2108_v30 = vadd.f32 %v1408_v2, %v2936_v36  ;;  %v1410_v31 = vpop.f32.mrb[63].mxu0  ;;  %1742 = vmatprep.mubr.bf16.mxu1 %v1524_v45  ;;  %vm1441_vm12 = vcmp.gt.f32.partialorder %v2106_v20, 0.0 }
 0x2a8   :  { %v1476_v33 = vmul.f32 %v2107_v55, %v2942_v14  ;;  %v2109_v40 = vadd.f32 %v1410_v31, %v2940_v61  ;;  %1743 = vmatmul.mubr.bf16.gmra.mrb[56].mxu1 %v1523_v47  ;;  %vm1442_vm13 = vcmp.gt.f32.partialorder %v2107_v55, 0.0 }
 0x2a9   :  { %vm1443_vm14 = vcmp.gt.f32.partialorder %v2108_v30, 0.0  ;;  %v1477_v51 = vmul.f32 %v2108_v30, %v2942_v14  ;;  %v1507_v4 = vsel %vm1441_vm12, %v2106_v20, %v1475_v28 }
 0x2aa   :  { %vm1444_vm15 = vcmp.gt.f32.partialorder %v2109_v40, 0.0  ;;  %v1478_v15 = vmul.f32 %v2109_v40, %v2942_v14  ;;  %v1508_v42 = vsel %vm1442_vm13, %v2107_v55, %v1476_v33  ;;  %v3013_v14 = vld [vmem:[%s3069_s7] ss:$0 sm:$0xff] }
 0x2ab   :  { %v1509_v22 = vsel %vm1443_vm14, %v2108_v30, %v1477_v51 }
 0x2ac   :  { %v1510_v17 = vsel %vm1444_vm15, %v2109_v40, %v1478_v15  ;;  %v1525_v36 = vpack.c.bf16 %v1509_v22, %v1507_v4 }
 0x2ad   :  { %v1526_v48 = vpack.c.bf16 %v1510_v17, %v1508_v42 }
 0x2af   :  { %1750 = vmatprep.mubr.bf16.mxu1 %v1526_v48 }
 0x2b0   :  { %1751 = vmatmul.mubr.bf16.gmra.mrb[60].mxu1 %v1525_v36 }
 0x2b1   :  { %2074 = vmatprep.mubr.msk.bf16.mxu1 %vm2437_vm0, %v2436_v19 }
 0x34b   :  { %v2001_v61 = vpop.f32.mrb[32].mxu1 }
 0x34c   :  { %v2002_v52 = vpop.f32.mrb[33].mxu1 }
 0x34d   :  { %v2003_v12 = vadd.f32 %v2002_v52, %v2001_v61  ;;  %v2004_v11 = vpop.f32.mrb[34].mxu1 }
 0x34e   :  { %v2005_v54 = vpop.f32.mrb[35].mxu1 }
 0x34f   :  { %v1697_v23 = vadd.f32 %v2003_v12, %v3013_v14  ;;  %v2006_v49 = vadd.f32 %v2005_v54, %v2004_v11 }
 0x351   :  { %v1777_v56 = vmul.f32 %v3015_v39, %v1697_v23  ;;  %v1700_v26 = vadd.f32 %v2006_v49, %v3013_v14  ;;  %vm1759_vm1 = vcmp.gt.f32.partialorder %v1697_v23, 0.0 }
 0x353   :  { %vm1760_vm2 = vcmp.gt.f32.partialorder %v1700_v26, 0.0  ;;  %v1778_v32 = vmul.f32 %v3015_v39, %v1700_v26  ;;  %v2007_v29 = vpop.f32.mrb[36].mxu1  ;;  %v1793_v63 = vsel %vm1759_vm1, %v1697_v23, %v1777_v56 }
 0x354   :  { %v2008_v57 = vpop.f32.mrb[37].mxu1 }
 0x355   :  { %v1794_v37 = vsel %vm1760_vm2, %v1700_v26, %v1778_v32  ;;  %v2009_v18 = vadd.f32 %v2008_v57, %v2007_v29  ;;  %v2010_v0 = vpop.f32.mrb[38].mxu1 }
 0x356   :  { %v2011_v10 = vpop.f32.mrb[39].mxu1  ;;  %v1810_v21 = vpack.c.bf16 %v1794_v37, %v1793_v63 }
 0x357   :  { %v1705_v59 = vadd.f32 %v2009_v18, %v3013_v14  ;;  %v2012_v3 = vadd.f32 %v2011_v10, %v2010_v0 }
 0x358   :  { %2059 = vmatpush3.bf16.xpose.msra.mxu1 %v1810_v21 }
 0x359   :  { %v1779_v41 = vmul.f32 %v3015_v39, %v1705_v59  ;;  %v1708_v60 = vadd.f32 %v2012_v3, %v3013_v14  ;;  %2060 = vmatprep.subr.bf16.mxu1 %v2436_v19  ;;  %vm1761_vm3 = vcmp.gt.f32.partialorder %v1705_v59, 0.0 }
 0x35b   :  { %vm1762_vm4 = vcmp.gt.f32.partialorder %v1708_v60, 0.0  ;;  %v1780_v44 = vmul.f32 %v3015_v39, %v1708_v60  ;;  %v2013_v1 = vpop.f32.mrb[40].mxu1  ;;  %v1795_v50 = vsel %vm1761_vm3, %v1705_v59, %v1779_v41 }
 0x35c   :  { %v2014_v7 = vpop.f32.mrb[41].mxu1 }
 0x35d   :  { %v1796_v58 = vsel %vm1762_vm4, %v1708_v60, %v1780_v44  ;;  %v2015_v6 = vadd.f32 %v2014_v7, %v2013_v1  ;;  %v2016_v16 = vpop.f32.mrb[42].mxu1 }
 0x35e   :  { %v2017_v13 = vpop.f32.mrb[43].mxu1  ;;  %v1811_v9 = vpack.c.bf16 %v1796_v58, %v1795_v50 }
 0x35f   :  { %v1713_v53 = vadd.f32 %v2015_v6, %v3013_v14  ;;  %v2018_v62 = vadd.f32 %v2017_v13, %v2016_v16 }
 0x360   :  { %2061 = vmatpush3.bf16.xpose.msra.mxu1 %v1811_v9 }
 0x361   :  { %v1781_v5 = vmul.f32 %v3015_v39, %v1713_v53  ;;  %v1716_v43 = vadd.f32 %v2018_v62, %v3013_v14  ;;  %2062 = vmatprep.subr.bf16.mxu1 %v2436_v19  ;;  %vm1763_vm5 = vcmp.gt.f32.partialorder %v1713_v53, 0.0 }
 0x363   :  { %vm1764_vm6 = vcmp.gt.f32.partialorder %v1716_v43, 0.0  ;;  %v1782_v46 = vmul.f32 %v3015_v39, %v1716_v43  ;;  %v2019_v34 = vpop.f32.mrb[44].mxu1  ;;  %v1797_v25 = vsel %vm1763_vm5, %v1713_v53, %v1781_v5 }
 0x364   :  { %v2020_v24 = vpop.f32.mrb[45].mxu1 }
 0x365   :  { %v1798_v8 = vsel %vm1764_vm6, %v1716_v43, %v1782_v46  ;;  %v2021_v27 = vadd.f32 %v2020_v24, %v2019_v34  ;;  %v2022_v38 = vpop.f32.mrb[46].mxu1 }
 0x366   :  { %v2023_v47 = vpop.f32.mrb[47].mxu1  ;;  %v1812_v20 = vpack.c.bf16 %v1798_v8, %v1797_v25 }
 0x367   :  { %v1721_v35 = vadd.f32 %v2021_v27, %v3013_v14  ;;  %v2024_v45 = vadd.f32 %v2023_v47, %v2022_v38 }
 0x368   :  { %2063 = vmatpush3.bf16.xpose.msra.mxu1 %v1812_v20  ;;  %v1809_v20 = vld [vmem:[%s3070_s8] sm:$0x1] }
 0x369   :  { %v1783_v55 = vmul.f32 %v3015_v39, %v1721_v35  ;;  %v1724_v2 = vadd.f32 %v2024_v45, %v3013_v14  ;;  %2064 = vmatprep.subr.bf16.mxu1 %v2436_v19  ;;  %vm1765_vm7 = vcmp.gt.f32.partialorder %v1721_v35, 0.0 }
 0x36b   :  { %vm1766_vm8 = vcmp.gt.f32.partialorder %v1724_v2, 0.0  ;;  %v1784_v28 = vmul.f32 %v3015_v39, %v1724_v2  ;;  %v2025_v30 = vpop.f32.mrb[48].mxu1  ;;  %v1799_v33 = vsel %vm1765_vm7, %v1721_v35, %v1783_v55  ;;  %v1819_v35 = vstv %s1984_s26 }
 0x36c   :  { %v2026_v31 = vpop.f32.mrb[49].mxu1 }
 0x36d   :  { %v1800_v40 = vsel %vm1766_vm8, %v1724_v2, %v1784_v28  ;;  %v2027_v51 = vadd.f32 %v2026_v31, %v2025_v30  ;;  %v2028_v15 = vpop.f32.mrb[50].mxu1 }
 0x36e   :  { %v2029_v4 = vpop.f32.mrb[51].mxu1  ;;  %v1813_v22 = vpack.c.bf16 %v1800_v40, %v1799_v33 }
 0x36f   :  { %v1729_v42 = vadd.f32 %v2027_v51, %v3013_v14  ;;  %v2030_v17 = vadd.f32 %v2029_v4, %v2028_v15 }
 0x370   :  { %2065 = vmatpush3.bf16.xpose.msra.mxu1 %v1813_v22 }
 0x371   :  { %v1785_v36 = vmul.f32 %v3015_v39, %v1729_v42  ;;  %v1732_v48 = vadd.f32 %v2030_v17, %v3013_v14  ;;  %2066 = vmatprep.subr.bf16.mxu1 %v2436_v19  ;;  %vm1767_vm9 = vcmp.gt.f32.partialorder %v1729_v42, 0.0 }
 0x373   :  { %vm1768_vm10 = vcmp.gt.f32.partialorder %v1732_v48, 0.0  ;;  %v1786_v61 = vmul.f32 %v3015_v39, %v1732_v48  ;;  %v2031_v52 = vpop.f32.mrb[52].mxu1  ;;  %v1801_v11 = vsel %vm1767_vm9, %v1729_v42, %v1785_v36 }
 0x374   :  { %v2032_v12 = vpop.f32.mrb[53].mxu1 }
 0x375   :  { %v1802_v54 = vsel %vm1768_vm10, %v1732_v48, %v1786_v61  ;;  %v2033_v23 = vadd.f32 %v2032_v12, %v2031_v52  ;;  %v2034_v49 = vpop.f32.mrb[54].mxu1 }
 0x376   :  { %v2035_v56 = vpop.f32.mrb[55].mxu1  ;;  %v1814_v26 = vpack.c.bf16 %v1802_v54, %v1801_v11 }
 0x377   :  { %v1737_v32 = vadd.f32 %v2033_v23, %v3013_v14  ;;  %v2036_v29 = vadd.f32 %v2035_v56, %v2034_v49 }
 0x378   :  { %2067 = vmatpush3.bf16.xpose.msra.mxu1 %v1814_v26 }
 0x379   :  { %v1787_v57 = vmul.f32 %v3015_v39, %v1737_v32  ;;  %v1740_v63 = vadd.f32 %v2036_v29, %v3013_v14  ;;  %2068 = vmatprep.subr.bf16.mxu1 %v2436_v19  ;;  %vm1769_vm11 = vcmp.gt.f32.partialorder %v1737_v32, 0.0 }
 0x37b   :  { %vm1770_vm12 = vcmp.gt.f32.partialorder %v1740_v63, 0.0  ;;  %v1788_v37 = vmul.f32 %v3015_v39, %v1740_v63  ;;  %v2037_v18 = vpop.f32.mrb[56].mxu1  ;;  %v1803_v10 = vsel %vm1769_vm11, %v1737_v32, %v1787_v57 }
 0x37c   :  { %v2038_v0 = vpop.f32.mrb[57].mxu1 }
 0x37d   :  { %v1804_v21 = vsel %vm1770_vm12, %v1740_v63, %v1788_v37  ;;  %v2039_v59 = vadd.f32 %v2038_v0, %v2037_v18  ;;  %v2040_v3 = vpop.f32.mrb[58].mxu1 }
 0x37e   :  { %v2041_v41 = vpop.f32.mrb[59].mxu1  ;;  %v1815_v60 = vpack.c.bf16 %v1804_v21, %v1803_v10 }
 0x37f   :  { %v1745_v44 = vadd.f32 %v2039_v59, %v3013_v14  ;;  %v2042_v1 = vadd.f32 %v2041_v41, %v2040_v3 }
 0x380   :  { %2069 = vmatpush3.bf16.xpose.msra.mxu1 %v1815_v60 }
 0x381   :  { %v1789_v7 = vmul.f32 %v3015_v39, %v1745_v44  ;;  %v1748_v50 = vadd.f32 %v2042_v1, %v3013_v14  ;;  %2070 = vmatprep.subr.bf16.mxu1 %v2436_v19  ;;  %vm1771_vm13 = vcmp.gt.f32.partialorder %v1745_v44, 0.0 }
 0x383   :  { %vm1772_vm14 = vcmp.gt.f32.partialorder %v1748_v50, 0.0  ;;  %v1790_v58 = vmul.f32 %v3015_v39, %v1748_v50  ;;  %v2043_v6 = vpop.f32.mrb[60].mxu1  ;;  %v1805_v13 = vsel %vm1771_vm13, %v1745_v44, %v1789_v7 }
 0x384   :  { %v2044_v16 = vpop.f32.mrb[61].mxu1 }
 0x385   :  { %v1806_v9 = vsel %vm1772_vm14, %v1748_v50, %v1790_v58  ;;  %v2045_v53 = vadd.f32 %v2044_v16, %v2043_v6  ;;  %v2046_v62 = vpop.f32.mrb[62].mxu1 }
 0x386   :  { %v2047_v5 = vpop.f32.mrb[63].mxu1  ;;  %v1816_v43 = vpack.c.bf16 %v1806_v9, %v1805_v13 }
 0x387   :  { %v1753_v46 = vadd.f32 %v2045_v53, %v3013_v14  ;;  %v2048_v34 = vadd.f32 %v2047_v5, %v2046_v62 }
 0x388   :  { %2071 = vmatpush3.bf16.xpose.msra.mxu1 %v1816_v43 }
 0x389   :  { %v1791_v24 = vmul.f32 %v3015_v39, %v1753_v46  ;;  %v1756_v25 = vadd.f32 %v2048_v34, %v3013_v14  ;;  %2072 = vmatprep.subr.bf16.mxu1 %v2436_v19  ;;  %vm1773_vm15 = vcmp.gt.f32.partialorder %v1753_v46, 0.0 }
 0x38b   :  { %vm1774_vm0 = vcmp.gt.f32.partialorder %v1756_v25, 0.0  ;;  %v1792_v8 = vmul.f32 %v3015_v39, %v1756_v25  ;;  %v1807_v27 = vsel %vm1773_vm15, %v1753_v46, %v1791_v24 }
 0x38d   :  { %v1808_v38 = vsel %vm1774_vm0, %v1756_v25, %v1792_v8 }
 0x38e   :  { %v1817_v47 = vpack.c.bf16 %v1808_v38, %v1807_v27 }
 0x390   :  { %2073 = vmatpush3.bf16.xpose.msra.mxu1 %v1817_v47 }
 0x397   :  { %2075 = vmatmul.mubr.bf16.vlgmr.msra.gmra.mrb[64].mxu1 %v1809_v20 }
 0x46a   :  { %v1854_v45 = vpop.f32.mrb[64].mxu1 }
 0x46b   :  { %v1855_v55 = vadd.f32 %v1854_v45, %v1819_v35  ;;  %v2076_v14 = vpop.f32.mrb[65].mxu1 }
 0x46c   :  { %v1857_v2 = vpop.f32.mrb[66].mxu1 }
 0x46d   :  { %1860 = vst [vmem:[%s3071_s9] sm:$0x1] %v1855_v55  ;;  %v2077_v19 = vpop.f32.mrb[67].mxu1 }
 0x46e   :  { %1865 = vsyncpa [#allocation3], 1 }
 0x46f   :  { %1866 = vsyncpa [#allocation7], 1 }
 0x470   :  { %1867 = vsyncpa [#allocation10], 1 }
 0x471   :  { %1868 = vsyncpa [#allocation4], 1 }

</bundles_post_ra>
